<compile_context>
chip_gen: v5e
topology: v5e:2x2
jax: 0.10.0
libtpu: 0.0.40
codegen_flags: <defaults>
</compile_context>

<pallas_src>
import jax
import jax.numpy as jnp
from jax import lax
from jax.experimental import pallas as pl
from jax.experimental.pallas import tpu as pltpu

D_MODEL = 32
NUM_HEADS = 4
D_FF = 64
NUM_LAYERS = 2
EPS = 1e-5            # eps of both the custom LayerNorm and F.layer_norm
QB = 128.0            # 2 ** (bit - 1), bit = 8
_INV_SQRT2 = 0.7071067811865476


# ---------------------------------------------------------------------------
# In-kernel helpers
# ---------------------------------------------------------------------------
def _erf(z):
    # Single-precision erf (Abramowitz & Stegun 7.1.26, |abs err| <= 1.5e-7).
    # TODO(synk): lax.erf has no guaranteed Mosaic lowering; this polynomial
    # matches exact-GELU's erf to f32 round-off level.
    a1, a2, a3, a4, a5 = (0.254829592, -0.284496736, 1.421413741,
                          -1.453152027, 1.061405429)
    sgn = jnp.where(z < 0.0, -1.0, 1.0)
    az = jnp.abs(z)
    t = 1.0 / (1.0 + 0.3275911 * az)
    poly = ((((a5 * t + a4) * t + a3) * t + a2) * t + a1) * t
    return sgn * (1.0 - poly * jnp.exp(-az * az))


def _f_layer_norm(t):
    # F.layer_norm over the last dim (biased variance, no affine).
    mu = jnp.mean(t, axis=-1, keepdims=True)
    c = t - mu
    var = jnp.mean(c * c, axis=-1, keepdims=True)
    return c * lax.rsqrt(var + EPS)


def _gmax(t):
    # Whole-tensor max as a (1, 1) array (kept 2-D for clean TPU layouts).
    return jnp.max(jnp.max(t, axis=-1, keepdims=True), axis=0, keepdims=True)


def _gmin(t):
    return jnp.min(jnp.min(t, axis=-1, keepdims=True), axis=0, keepdims=True)


# ---------------------------------------------------------------------------
# The fused encoder kernel: one grid step == one EncoderBlock.
# ---------------------------------------------------------------------------
def encoder_kernel(x_ref, keep_ref, fill_ref, alpha_ref, beta_ref,
                   wqkv_ref, w0_ref, w1_ref, w2_ref,
                   scqkv_ref, sc0_ref, sc1_ref, sc2_ref, b1_ref, b2_ref,
                   o_ref, att_ref):
    d = o_ref.shape[-1]
    dk = d // NUM_HEADS

    # Initialize the resident activation from the input on the first layer.
    @pl.when(pl.program_id(0) == 0)
    def _():
        o_ref[...] = x_ref[...]

    x = o_ref[...]                      # (N, D) f32, carried across layers
    alpha = alpha_ref[0]                # (1, D)
    beta = beta_ref[0]                  # (1, D)

    def rc_layer_norm(t):
        # Custom LayerNorm: unbiased std, eps added to the std.
        mu = jnp.mean(t, axis=-1, keepdims=True)
        c = t - mu
        std = jnp.sqrt(jnp.sum(c * c, axis=-1, keepdims=True) / (t.shape[-1] - 1))
        return (alpha * c) / (std + EPS) + beta

    # ---- sublayer 1: x = x + W0(MHA(Wq/Wk/Wv(LN_rc(x)))) ---------------------
    z1 = rc_layer_norm(x)
    ln_a = _f_layer_norm(z1)
    amax = _gmax(jnp.abs(ln_a))
    # TODO(synk): torch additionally casts the quantized values to int8,
    # wrapping the single +128 extreme element; we keep the rounded f32 value.
    q_a = jnp.round(ln_a * (QB / amax)).astype(jnp.bfloat16)     # exact ints
    qkv = jnp.dot(q_a, wqkv_ref[0], preferred_element_type=jnp.float32)
    qkv = (qkv * (amax / QB)) * scqkv_ref[0]                     # dequant*beta

    keep = keep_ref[...]
    fill = fill_ref[...]
    for h in range(NUM_HEADS):
        q_h = qkv[:, h * dk:(h + 1) * dk]
        k_h = qkv[:, d + h * dk: d + (h + 1) * dk]
        v_h = qkv[:, 2 * d + h * dk: 2 * d + (h + 1) * dk]
        s = lax.dot_general(q_h, k_h, (((1,), (1,)), ((), ())),
                            preferred_element_type=jnp.float32)
        s = s / (float(dk) ** 0.5)
        s = jnp.where(keep > 0.5, s, fill)
        mx = jnp.max(s, axis=-1, keepdims=True)
        e = jnp.exp(s - mx)
        p = e / jnp.sum(e, axis=-1, keepdims=True)
        # TODO(synk): attention-prob / residual dropout omitted (eval forward).
        att_ref[:, h * dk:(h + 1) * dk] = jnp.dot(
            p, v_h, preferred_element_type=jnp.float32)

    att = att_ref[...]                                           # (N, D)
    ln_o = _f_layer_norm(att)
    omax = _gmax(jnp.abs(ln_o))
    q_o = jnp.round(ln_o * (QB / omax)).astype(jnp.bfloat16)
    y0 = jnp.dot(q_o, w0_ref[0], preferred_element_type=jnp.float32)
    x = x + (y0 * (omax / QB)) * sc0_ref[0]

    # ---- sublayer 2: x = x + W2(gelu(W1(LN_rc(x)))) --------------------------
    z2 = rc_layer_norm(x)
    ln_1 = _f_layer_norm(z2)
    gmin = _gmin(ln_1)                                           # eta
    shifted = ln_1 - gmin
    smax = _gmax(jnp.abs(shifted))
    q_1 = jnp.round(shifted * (QB / smax)).astype(jnp.bfloat16)
    h1 = jnp.dot(q_1, w1_ref[0], preferred_element_type=jnp.float32)
    h1 = (h1 * (smax / QB) + gmin) * sc1_ref[0] + b1_ref[0]      # nl_next path
    h1 = 0.5 * h1 * (1.0 + _erf(h1 * _INV_SQRT2))                # exact GELU

    ln_2 = _f_layer_norm(h1)
    hmax = _gmax(jnp.abs(ln_2))
    q_2 = jnp.round(ln_2 * (QB / hmax)).astype(jnp.bfloat16)
    y2 = jnp.dot(q_2, w2_ref[0], preferred_element_type=jnp.float32)
    x = x + ((y2 * (hmax / QB)) * sc2_ref[0] + b2_ref[0])

    o_ref[...] = x


# ---------------------------------------------------------------------------
# Wrapper-side (tiny, weight-only) prep: ternary sign weights, L1 scales, masks.
# ---------------------------------------------------------------------------
def _sign_t_bf16(w):
    # sign(W - mean(W))^T as +/-1 (exact in bf16), laid out (in, out).
    return jnp.sign(w - jnp.mean(w)).T.astype(jnp.bfloat16)


def _l1_beta(w):
    return jnp.sum(jnp.abs(w)) / (w.shape[0] * w.shape[1])


def _prep_layer_params(params_list):
    wqkv, w0, w1, w2 = [], [], [], []
    scqkv, sc0, sc1, sc2, b1, b2, al, be = [], [], [], [], [], [], [], []
    for p in params_list:
        d = p["wq"].shape[1]
        dff = p["w1"].shape[0]
        wqkv.append(jnp.concatenate(
            [_sign_t_bf16(p["wq"]), _sign_t_bf16(p["wk"]), _sign_t_bf16(p["wv"])],
            axis=1))                                             # (D, 3D)
        w0.append(_sign_t_bf16(p["w0"]))                         # (D, D)
        w1.append(_sign_t_bf16(p["w1"]))                         # (D, DFF)
        w2.append(_sign_t_bf16(p["w2"]))                         # (DFF, D)
        scqkv.append(jnp.concatenate(
            [jnp.broadcast_to(_l1_beta(p["wq"]), (d,)),
             jnp.broadcast_to(_l1_beta(p["wk"]), (d,)),
             jnp.broadcast_to(_l1_beta(p["wv"]), (d,))])[None, :].astype(jnp.float32))
        sc0.append(jnp.broadcast_to(_l1_beta(p["w0"]), (1, d)).astype(jnp.float32))
        sc1.append(jnp.broadcast_to(_l1_beta(p["w1"]), (1, dff)).astype(jnp.float32))
        sc2.append(jnp.broadcast_to(_l1_beta(p["w2"]), (1, d)).astype(jnp.float32))
        b1.append(p["b1"].reshape(1, dff).astype(jnp.float32))
        b2.append(p["b2"].reshape(1, d).astype(jnp.float32))
        al.append(p["rc_alpha"].reshape(1, d).astype(jnp.float32))
        be.append(p["rc_beta"].reshape(1, d).astype(jnp.float32))
    st = lambda xs: jnp.stack(xs, axis=0)
    return (st(wqkv), st(w0), st(w1), st(w2),
            st(scqkv), st(sc0), st(sc1), st(sc2), st(b1), st(b2), st(al), st(be))


def _prep_masks(src_mask, b, s):
    """Block-diagonal keep / fill masks for batch-flattened attention."""
    m = jnp.broadcast_to(src_mask.astype(jnp.float32), (b, s, s))
    n = b * s
    keep = jnp.zeros((n, n), jnp.float32)
    # Cross-batch fill is strictly below the in-batch -1e9 fill so that a
    # fully-masked row still softmaxes to uniform 1/S over its own batch,
    # exactly matching the per-batch PyTorch computation.
    fill = jnp.full((n, n), -2.0e9, jnp.float32)
    for bi in range(b):
        sl = slice(bi * s, (bi + 1) * s)
        keep = keep.at[sl, sl].set(m[bi])
        fill = fill.at[sl, sl].set(-1.0e9)
    return keep, fill


@jax.jit
def encoder_forward(x, src_mask, params_list):
    b, s, d = x.shape
    n = b * s
    dff = params_list[0]["w1"].shape[0]
    num_layers = len(params_list)
    x2d = x.reshape(n, d).astype(jnp.float32)
    keep, fill = _prep_masks(src_mask, b, s)
    (wqkv, w0, w1, w2, scqkv, sc0, sc1, sc2, b1, b2, al, be) = \
        _prep_layer_params(params_list)

    full2 = lambda shape: pl.BlockSpec(shape, lambda l: (0, 0))
    row3 = lambda last: pl.BlockSpec((1, 1, last), lambda l: (l, 0, 0))
    mat3 = lambda r, c: pl.BlockSpec((1, r, c), lambda l: (l, 0, 0))

    out2d = pl.pallas_call(
        encoder_kernel,
        out_shape=jax.ShapeDtypeStruct((n, d), jnp.float32),
        grid=(num_layers,),
        in_specs=[
            full2((n, d)),          # x (read once, layer 0)
            full2((n, n)),          # keep mask (resident)
            full2((n, n)),          # fill values (resident)
            row3(d), row3(d),       # rc alpha / beta
            mat3(d, 3 * d),         # fused sign(Wq|Wk|Wv)^T   (bf16 +/-1)
            mat3(d, d),             # sign(W0)^T
            mat3(d, dff),           # sign(W1)^T
            mat3(dff, d),           # sign(W2)^T
            row3(3 * d),            # per-column beta_q|k|v
            row3(d),                # beta_0
            row3(dff),              # beta_1
            row3(d),                # beta_2
            row3(dff),              # b1
            row3(d),                # b2
        ],
        out_specs=pl.BlockSpec((n, d), lambda l: (0, 0)),   # resident carry
        scratch_shapes=[pltpu.VMEM((n, d), jnp.float32)],   # merged-head buffer
        compiler_params=pltpu.CompilerParams(
            dimension_semantics=("arbitrary",)),
    )(x2d, keep, fill, al, be, wqkv, w0, w1, w2, scqkv, sc0, sc1, sc2, b1, b2)
    return out2d.reshape(b, s, d)


if __name__ == "__main__":
    B, S = 2, 8
    D, DFF, L = D_MODEL, D_FF, NUM_LAYERS

    key = jax.random.PRNGKey(0)
    keys = jax.random.split(key, 1 + 8 * L)
    x = jax.random.normal(keys[0], (B, S, D), dtype=jnp.float32)
    # src_mask: 1 = attend, 0 = masked out (mask attention to the last key).
    src_mask = jnp.ones((B, S, S), dtype=jnp.float32).at[:, :, -1].set(0.0)

    params_list = []
    k_iter = iter(keys[1:])
    for _ in range(L):
        params_list.append(dict(
            rc_alpha=jnp.ones((D,), jnp.float32),
            rc_beta=jnp.zeros((D,), jnp.float32),
            wq=jax.random.normal(next(k_iter), (D, D), jnp.float32),
            wk=jax.random.normal(next(k_iter), (D, D), jnp.float32),
            wv=jax.random.normal(next(k_iter), (D, D), jnp.float32),
            w0=jax.random.normal(next(k_iter), (D, D), jnp.float32),
            w1=jax.random.normal(next(k_iter), (DFF, D), jnp.float32),
            b1=jax.random.normal(next(k_iter), (DFF,), jnp.float32),
            w2=jax.random.normal(next(k_iter), (D, DFF), jnp.float32),
            b2=jax.random.normal(next(k_iter), (D,), jnp.float32),
        ))

    out = encoder_forward(x, src_mask, params_list)
    jax.block_until_ready(out)
    assert out.shape == (B, S, D) and out.dtype == jnp.float32
    assert bool(jnp.all(jnp.isfinite(out)))
    print("KERNEL_OK")
</pallas_src>

<mosaic_0001>
module attributes {stable_mosaic.version = 11 : i64} {
  func.func @encoder_kernel(%arg0: i32, %arg1: memref<16x32xf32, #tpu.memory_space<vmem>>, %arg2: memref<16x16xf32, #tpu.memory_space<vmem>>, %arg3: memref<16x16xf32, #tpu.memory_space<vmem>>, %arg4: memref<1x1x32xf32, #tpu.memory_space<vmem>>, %arg5: memref<1x1x32xf32, #tpu.memory_space<vmem>>, %arg6: memref<1x32x96xbf16, #tpu.memory_space<vmem>>, %arg7: memref<1x32x32xbf16, #tpu.memory_space<vmem>>, %arg8: memref<1x32x64xbf16, #tpu.memory_space<vmem>>, %arg9: memref<1x64x32xbf16, #tpu.memory_space<vmem>>, %arg10: memref<1x1x96xf32, #tpu.memory_space<vmem>>, %arg11: memref<1x1x32xf32, #tpu.memory_space<vmem>>, %arg12: memref<1x1x64xf32, #tpu.memory_space<vmem>>, %arg13: memref<1x1x32xf32, #tpu.memory_space<vmem>>, %arg14: memref<1x1x64xf32, #tpu.memory_space<vmem>>, %arg15: memref<1x1x32xf32, #tpu.memory_space<vmem>>, %arg16: memref<16x32xf32, #tpu.memory_space<vmem>>, %arg17: memref<16x32xf32, #tpu.memory_space<vmem>>) attributes {dimension_semantics = [#tpu.dimension_semantics<arbitrary>], iteration_bounds = array<i64: 2>, scalar_prefetch = 0 : i64, scratch_operands = 1 : i64, tpu.core_type = #tpu.core_type<tc>, window_params = [{pipeline_mode = #tpu.pipeline_mode<synchronous>, transform_indices = @transform_0, window_bounds = array<i64: 16, 32>}, {pipeline_mode = #tpu.pipeline_mode<synchronous>, transform_indices = @transform_1, window_bounds = array<i64: 16, 16>}, {pipeline_mode = #tpu.pipeline_mode<synchronous>, transform_indices = @transform_2, window_bounds = array<i64: 16, 16>}, {transform_indices = @transform_3, window_bounds = array<i64: 1, 1, 32>}, {transform_indices = @transform_4, window_bounds = array<i64: 1, 1, 32>}, {transform_indices = @transform_5, window_bounds = array<i64: 1, 32, 96>}, {transform_indices = @transform_6, window_bounds = array<i64: 1, 32, 32>}, {transform_indices = @transform_7, window_bounds = array<i64: 1, 32, 64>}, {transform_indices = @transform_8, window_bounds = array<i64: 1, 64, 32>}, {transform_indices = @transform_9, window_bounds = array<i64: 1, 1, 96>}, {transform_indices = @transform_10, window_bounds = array<i64: 1, 1, 32>}, {transform_indices = @transform_11, window_bounds = array<i64: 1, 1, 64>}, {transform_indices = @transform_12, window_bounds = array<i64: 1, 1, 32>}, {transform_indices = @transform_13, window_bounds = array<i64: 1, 1, 64>}, {transform_indices = @transform_14, window_bounds = array<i64: 1, 1, 32>}, {pipeline_mode = #tpu.pipeline_mode<synchronous>, transform_indices = @transform_15, window_bounds = array<i64: 16, 32>}]} {
    %c0_i32 = arith.constant 0 : i32
    %0 = arith.cmpi eq, %arg0, %c0_i32 : i32
    %1 = arith.extui %0 : i1 to i32
    %c0_i32_0 = arith.constant 0 : i32
    %2 = arith.cmpi ne, %1, %c0_i32_0 : i32
    scf.if %2 {
      %c0_142 = arith.constant 0 : index
      %c0_143 = arith.constant 0 : index
      %343 = vector.load %arg1[%c0_142, %c0_143] : memref<16x32xf32, #tpu.memory_space<vmem>>, vector<16x32xf32>
      %c0_144 = arith.constant 0 : index
      %c0_145 = arith.constant 0 : index
      %344 = vector.load %arg16[%c0_144, %c0_145] : memref<16x32xf32, #tpu.memory_space<vmem>>, vector<16x32xf32>
      tpu.vector_store %arg16[%c0_144, %c0_145], %343 {strides = array<i32>} : memref<16x32xf32, #tpu.memory_space<vmem>>, vector<16x32xf32>,
    } else {
    }
    %c0 = arith.constant 0 : index
    %c0_1 = arith.constant 0 : index
    %3 = vector.load %arg16[%c0, %c0_1] : memref<16x32xf32, #tpu.memory_space<vmem>>, vector<16x32xf32>
    %c0_2 = arith.constant 0 : index
    %c0_3 = arith.constant 0 : index
    %c0_4 = arith.constant 0 : index
    %4 = vector.load %arg4[%c0_2, %c0_3, %c0_4] : memref<1x1x32xf32, #tpu.memory_space<vmem>>, vector<1x1x32xf32>
    %5 = vector.shape_cast %4 : vector<1x1x32xf32> to vector<1x32xf32>
    %c0_5 = arith.constant 0 : index
    %c0_6 = arith.constant 0 : index
    %c0_7 = arith.constant 0 : index
    %6 = vector.load %arg5[%c0_5, %c0_6, %c0_7] : memref<1x1x32xf32, #tpu.memory_space<vmem>>, vector<1x1x32xf32>
    %7 = vector.shape_cast %6 : vector<1x1x32xf32> to vector<1x32xf32>
    %cst = arith.constant dense<0.000000e+00> : vector<16xf32>
    %8 = vector.multi_reduction <add>, %3, %cst [1] : vector<16x32xf32> to vector<16xf32>
    %9 = vector.shape_cast %8 : vector<16xf32> to vector<16x1xf32>
    %cst_8 = arith.constant 3.200000e+01 : f32
    %10 = vector.broadcast %cst_8 : f32 to vector<16x1xf32>
    %11 = arith.divf %9, %10 : vector<16x1xf32>
    %12 = vector.broadcast %11 : vector<16x1xf32> to vector<16x32xf32>
    %13 = arith.subf %3, %12 : vector<16x32xf32>
    %14 = arith.mulf %13, %13 : vector<16x32xf32>
    %cst_9 = arith.constant dense<0.000000e+00> : vector<16xf32>
    %15 = vector.multi_reduction <add>, %14, %cst_9 [1] : vector<16x32xf32> to vector<16xf32>
    %16 = vector.shape_cast %15 : vector<16xf32> to vector<16x1xf32>
    %cst_10 = arith.constant 3.100000e+01 : f32
    %17 = vector.broadcast %cst_10 : f32 to vector<16x1xf32>
    %18 = arith.divf %16, %17 : vector<16x1xf32>
    %19 = math.sqrt %18 : vector<16x1xf32>
    %20 = vector.broadcast %5 : vector<1x32xf32> to vector<16x32xf32>
    %21 = arith.mulf %20, %13 : vector<16x32xf32>
    %cst_11 = arith.constant 9.99999974E-6 : f32
    %22 = vector.broadcast %cst_11 : f32 to vector<16x1xf32>
    %23 = arith.addf %19, %22 : vector<16x1xf32>
    %24 = vector.broadcast %23 : vector<16x1xf32> to vector<16x32xf32>
    %25 = arith.divf %21, %24 : vector<16x32xf32>
    %26 = vector.broadcast %7 : vector<1x32xf32> to vector<16x32xf32>
    %27 = arith.addf %25, %26 : vector<16x32xf32>
    %cst_12 = arith.constant dense<0.000000e+00> : vector<16xf32>
    %28 = vector.multi_reduction <add>, %27, %cst_12 [1] : vector<16x32xf32> to vector<16xf32>
    %29 = vector.shape_cast %28 : vector<16xf32> to vector<16x1xf32>
    %cst_13 = arith.constant 3.200000e+01 : f32
    %30 = vector.broadcast %cst_13 : f32 to vector<16x1xf32>
    %31 = arith.divf %29, %30 : vector<16x1xf32>
    %32 = vector.broadcast %31 : vector<16x1xf32> to vector<16x32xf32>
    %33 = arith.subf %27, %32 : vector<16x32xf32>
    %34 = arith.mulf %33, %33 : vector<16x32xf32>
    %cst_14 = arith.constant dense<0.000000e+00> : vector<16xf32>
    %35 = vector.multi_reduction <add>, %34, %cst_14 [1] : vector<16x32xf32> to vector<16xf32>
    %36 = vector.shape_cast %35 : vector<16xf32> to vector<16x1xf32>
    %cst_15 = arith.constant 3.200000e+01 : f32
    %37 = vector.broadcast %cst_15 : f32 to vector<16x1xf32>
    %38 = arith.divf %36, %37 : vector<16x1xf32>
    %cst_16 = arith.constant 9.99999974E-6 : f32
    %39 = vector.broadcast %cst_16 : f32 to vector<16x1xf32>
    %40 = arith.addf %38, %39 : vector<16x1xf32>
    %41 = math.rsqrt %40 : vector<16x1xf32>
    %42 = vector.broadcast %41 : vector<16x1xf32> to vector<16x32xf32>
    %43 = arith.mulf %33, %42 : vector<16x32xf32>
    %44 = math.absf %43 : vector<16x32xf32>
    %cst_17 = arith.constant dense<0xFF800000> : vector<16xf32>
    %45 = vector.multi_reduction <maximumf>, %44, %cst_17 [1] : vector<16x32xf32> to vector<16xf32>
    %46 = vector.shape_cast %45 : vector<16xf32> to vector<16x1xf32>
    %cst_18 = arith.constant dense<0xFF800000> : vector<1xf32>
    %47 = vector.multi_reduction <maximumf>, %46, %cst_18 [0] : vector<16x1xf32> to vector<1xf32>
    %48 = vector.shape_cast %47 : vector<1xf32> to vector<1x1xf32>
    %cst_19 = arith.constant 1.280000e+02 : f32
    %49 = vector.broadcast %cst_19 : f32 to vector<1x1xf32>
    %50 = arith.divf %49, %48 : vector<1x1xf32>
    %51 = vector.broadcast %50 : vector<1x1xf32> to vector<16x32xf32>
    %52 = arith.mulf %43, %51 : vector<16x32xf32>
    %53 = math.roundeven %52 : vector<16x32xf32>
    %54 = arith.truncf %53 : vector<16x32xf32> to vector<16x32xbf16>
    %c0_20 = arith.constant 0 : index
    %c0_21 = arith.constant 0 : index
    %c0_22 = arith.constant 0 : index
    %55 = vector.load %arg6[%c0_20, %c0_21, %c0_22] : memref<1x32x96xbf16, #tpu.memory_space<vmem>>, vector<1x32x96xbf16>
    %56 = vector.shape_cast %55 : vector<1x32x96xbf16> to vector<32x96xbf16>
    %cst_23 = arith.constant dense<0.000000e+00> : vector<16x96xf32>
    %57 = tpu.matmul %54, %56, %cst_23 {dimension_numbers = #tpu.dot_dimension_numbers<[1], [0], [0], [1], [0, 0, 1, 1], [], []>} : vector<16x32xbf16>, vector<32x96xbf16>, vector<16x96xf32> -> vector<16x96xf32>
    %cst_24 = arith.constant 1.280000e+02 : f32
    %58 = vector.broadcast %cst_24 : f32 to vector<1x1xf32>
    %59 = arith.divf %48, %58 : vector<1x1xf32>
    %60 = vector.broadcast %59 : vector<1x1xf32> to vector<16x96xf32>
    %61 = arith.mulf %57, %60 : vector<16x96xf32>
    %c0_25 = arith.constant 0 : index
    %c0_26 = arith.constant 0 : index
    %c0_27 = arith.constant 0 : index
    %62 = vector.load %arg10[%c0_25, %c0_26, %c0_27] : memref<1x1x96xf32, #tpu.memory_space<vmem>>, vector<1x1x96xf32>
    %63 = vector.shape_cast %62 : vector<1x1x96xf32> to vector<1x96xf32>
    %64 = vector.broadcast %63 : vector<1x96xf32> to vector<16x96xf32>
    %65 = arith.mulf %61, %64 : vector<16x96xf32>
    %c0_28 = arith.constant 0 : index
    %c0_29 = arith.constant 0 : index
    %66 = vector.load %arg2[%c0_28, %c0_29] : memref<16x16xf32, #tpu.memory_space<vmem>>, vector<16x16xf32>
    %c0_30 = arith.constant 0 : index
    %c0_31 = arith.constant 0 : index
    %67 = vector.load %arg3[%c0_30, %c0_31] : memref<16x16xf32, #tpu.memory_space<vmem>>, vector<16x16xf32>
    %68 = vector.extract_strided_slice %65 {offsets = [0, 0], sizes = [16, 8], strides = [1, 1]} : vector<16x96xf32> to vector<16x8xf32>
    %69 = vector.extract_strided_slice %65 {offsets = [0, 32], sizes = [16, 8], strides = [1, 1]} : vector<16x96xf32> to vector<16x8xf32>
    %70 = vector.extract_strided_slice %65 {offsets = [0, 64], sizes = [16, 8], strides = [1, 1]} : vector<16x96xf32> to vector<16x8xf32>
    %cst_32 = arith.constant dense<0.000000e+00> : vector<16x16xf32>
    %71 = tpu.matmul %68, %69, %cst_32 {dimension_numbers = #tpu.dot_dimension_numbers<[1], [1], [0], [0], [0, 0, 1, 0], [], []>} : vector<16x8xf32>, vector<16x8xf32>, vector<16x16xf32> -> vector<16x16xf32>
    %cst_33 = arith.constant 2.82842708 : f32
    %72 = vector.broadcast %cst_33 : f32 to vector<16x16xf32>
    %73 = arith.divf %71, %72 : vector<16x16xf32>
    %cst_34 = arith.constant 5.000000e-01 : f32
    %74 = vector.broadcast %cst_34 : f32 to vector<16x16xf32>
    %75 = arith.cmpf ogt, %66, %74 : vector<16x16xf32>
    %76 = arith.select %75, %73, %67 : vector<16x16xi1>, vector<16x16xf32>
    %cst_35 = arith.constant dense<0xFF800000> : vector<16xf32>
    %77 = vector.multi_reduction <maximumf>, %76, %cst_35 [1] : vector<16x16xf32> to vector<16xf32>
    %78 = vector.shape_cast %77 : vector<16xf32> to vector<16x1xf32>
    %79 = vector.broadcast %78 : vector<16x1xf32> to vector<16x16xf32>
    %80 = arith.subf %76, %79 : vector<16x16xf32>
    %81 = math.exp %80 : vector<16x16xf32>
    %cst_36 = arith.constant dense<0.000000e+00> : vector<16xf32>
    %82 = vector.multi_reduction <add>, %81, %cst_36 [1] : vector<16x16xf32> to vector<16xf32>
    %83 = vector.shape_cast %82 : vector<16xf32> to vector<16x1xf32>
    %84 = vector.broadcast %83 : vector<16x1xf32> to vector<16x16xf32>
    %85 = arith.divf %81, %84 : vector<16x16xf32>
    %cst_37 = arith.constant dense<0.000000e+00> : vector<16x8xf32>
    %86 = tpu.matmul %85, %70, %cst_37 {dimension_numbers = #tpu.dot_dimension_numbers<[1], [0], [0], [1], [0, 0, 1, 1], [], []>} : vector<16x16xf32>, vector<16x8xf32>, vector<16x8xf32> -> vector<16x8xf32>
    %c0_38 = arith.constant 0 : index
    %c0_39 = arith.constant 0 : index
    %87 = vector.load %arg17[%c0_38, %c0_39] : memref<16x32xf32, #tpu.memory_space<vmem>>, vector<16x8xf32>
    tpu.vector_store %arg17[%c0_38, %c0_39], %86 {strides = array<i32>} : memref<16x32xf32, #tpu.memory_space<vmem>>, vector<16x8xf32>,
    %88 = vector.extract_strided_slice %65 {offsets = [0, 8], sizes = [16, 8], strides = [1, 1]} : vector<16x96xf32> to vector<16x8xf32>
    %89 = vector.extract_strided_slice %65 {offsets = [0, 40], sizes = [16, 8], strides = [1, 1]} : vector<16x96xf32> to vector<16x8xf32>
    %90 = vector.extract_strided_slice %65 {offsets = [0, 72], sizes = [16, 8], strides = [1, 1]} : vector<16x96xf32> to vector<16x8xf32>
    %cst_40 = arith.constant dense<0.000000e+00> : vector<16x16xf32>
    %91 = tpu.matmul %88, %89, %cst_40 {dimension_numbers = #tpu.dot_dimension_numbers<[1], [1], [0], [0], [0, 0, 1, 0], [], []>} : vector<16x8xf32>, vector<16x8xf32>, vector<16x16xf32> -> vector<16x16xf32>
    %cst_41 = arith.constant 2.82842708 : f32
    %92 = vector.broadcast %cst_41 : f32 to vector<16x16xf32>
    %93 = arith.divf %91, %92 : vector<16x16xf32>
    %cst_42 = arith.constant 5.000000e-01 : f32
    %94 = vector.broadcast %cst_42 : f32 to vector<16x16xf32>
    %95 = arith.cmpf ogt, %66, %94 : vector<16x16xf32>
    %96 = arith.select %95, %93, %67 : vector<16x16xi1>, vector<16x16xf32>
    %cst_43 = arith.constant dense<0xFF800000> : vector<16xf32>
    %97 = vector.multi_reduction <maximumf>, %96, %cst_43 [1] : vector<16x16xf32> to vector<16xf32>
    %98 = vector.shape_cast %97 : vector<16xf32> to vector<16x1xf32>
    %99 = vector.broadcast %98 : vector<16x1xf32> to vector<16x16xf32>
    %100 = arith.subf %96, %99 : vector<16x16xf32>
    %101 = math.exp %100 : vector<16x16xf32>
    %cst_44 = arith.constant dense<0.000000e+00> : vector<16xf32>
    %102 = vector.multi_reduction <add>, %101, %cst_44 [1] : vector<16x16xf32> to vector<16xf32>
    %103 = vector.shape_cast %102 : vector<16xf32> to vector<16x1xf32>
    %104 = vector.broadcast %103 : vector<16x1xf32> to vector<16x16xf32>
    %105 = arith.divf %101, %104 : vector<16x16xf32>
    %cst_45 = arith.constant dense<0.000000e+00> : vector<16x8xf32>
    %106 = tpu.matmul %105, %90, %cst_45 {dimension_numbers = #tpu.dot_dimension_numbers<[1], [0], [0], [1], [0, 0, 1, 1], [], []>} : vector<16x16xf32>, vector<16x8xf32>, vector<16x8xf32> -> vector<16x8xf32>
    %c0_46 = arith.constant 0 : index
    %c8 = arith.constant 8 : index
    %107 = vector.load %arg17[%c0_46, %c8] : memref<16x32xf32, #tpu.memory_space<vmem>>, vector<16x8xf32>
    tpu.vector_store %arg17[%c0_46, %c8], %106 {strides = array<i32>} : memref<16x32xf32, #tpu.memory_space<vmem>>, vector<16x8xf32>,
    %108 = vector.extract_strided_slice %65 {offsets = [0, 16], sizes = [16, 8], strides = [1, 1]} : vector<16x96xf32> to vector<16x8xf32>
    %109 = vector.extract_strided_slice %65 {offsets = [0, 48], sizes = [16, 8], strides = [1, 1]} : vector<16x96xf32> to vector<16x8xf32>
    %110 = vector.extract_strided_slice %65 {offsets = [0, 80], sizes = [16, 8], strides = [1, 1]} : vector<16x96xf32> to vector<16x8xf32>
    %cst_47 = arith.constant dense<0.000000e+00> : vector<16x16xf32>
    %111 = tpu.matmul %108, %109, %cst_47 {dimension_numbers = #tpu.dot_dimension_numbers<[1], [1], [0], [0], [0, 0, 1, 0], [], []>} : vector<16x8xf32>, vector<16x8xf32>, vector<16x16xf32> -> vector<16x16xf32>
    %cst_48 = arith.constant 2.82842708 : f32
    %112 = vector.broadcast %cst_48 : f32 to vector<16x16xf32>
    %113 = arith.divf %111, %112 : vector<16x16xf32>
    %cst_49 = arith.constant 5.000000e-01 : f32
    %114 = vector.broadcast %cst_49 : f32 to vector<16x16xf32>
    %115 = arith.cmpf ogt, %66, %114 : vector<16x16xf32>
    %116 = arith.select %115, %113, %67 : vector<16x16xi1>, vector<16x16xf32>
    %cst_50 = arith.constant dense<0xFF800000> : vector<16xf32>
    %117 = vector.multi_reduction <maximumf>, %116, %cst_50 [1] : vector<16x16xf32> to vector<16xf32>
    %118 = vector.shape_cast %117 : vector<16xf32> to vector<16x1xf32>
    %119 = vector.broadcast %118 : vector<16x1xf32> to vector<16x16xf32>
    %120 = arith.subf %116, %119 : vector<16x16xf32>
    %121 = math.exp %120 : vector<16x16xf32>
    %cst_51 = arith.constant dense<0.000000e+00> : vector<16xf32>
    %122 = vector.multi_reduction <add>, %121, %cst_51 [1] : vector<16x16xf32> to vector<16xf32>
    %123 = vector.shape_cast %122 : vector<16xf32> to vector<16x1xf32>
    %124 = vector.broadcast %123 : vector<16x1xf32> to vector<16x16xf32>
    %125 = arith.divf %121, %124 : vector<16x16xf32>
    %cst_52 = arith.constant dense<0.000000e+00> : vector<16x8xf32>
    %126 = tpu.matmul %125, %110, %cst_52 {dimension_numbers = #tpu.dot_dimension_numbers<[1], [0], [0], [1], [0, 0, 1, 1], [], []>} : vector<16x16xf32>, vector<16x8xf32>, vector<16x8xf32> -> vector<16x8xf32>
    %c0_53 = arith.constant 0 : index
    %c16 = arith.constant 16 : index
    %127 = vector.load %arg17[%c0_53, %c16] : memref<16x32xf32, #tpu.memory_space<vmem>>, vector<16x8xf32>
    tpu.vector_store %arg17[%c0_53, %c16], %126 {strides = array<i32>} : memref<16x32xf32, #tpu.memory_space<vmem>>, vector<16x8xf32>,
    %128 = vector.extract_strided_slice %65 {offsets = [0, 24], sizes = [16, 8], strides = [1, 1]} : vector<16x96xf32> to vector<16x8xf32>
    %129 = vector.extract_strided_slice %65 {offsets = [0, 56], sizes = [16, 8], strides = [1, 1]} : vector<16x96xf32> to vector<16x8xf32>
    %130 = vector.extract_strided_slice %65 {offsets = [0, 88], sizes = [16, 8], strides = [1, 1]} : vector<16x96xf32> to vector<16x8xf32>
    %cst_54 = arith.constant dense<0.000000e+00> : vector<16x16xf32>
    %131 = tpu.matmul %128, %129, %cst_54 {dimension_numbers = #tpu.dot_dimension_numbers<[1], [1], [0], [0], [0, 0, 1, 0], [], []>} : vector<16x8xf32>, vector<16x8xf32>, vector<16x16xf32> -> vector<16x16xf32>
    %cst_55 = arith.constant 2.82842708 : f32
    %132 = vector.broadcast %cst_55 : f32 to vector<16x16xf32>
    %133 = arith.divf %131, %132 : vector<16x16xf32>
    %cst_56 = arith.constant 5.000000e-01 : f32
    %134 = vector.broadcast %cst_56 : f32 to vector<16x16xf32>
    %135 = arith.cmpf ogt, %66, %134 : vector<16x16xf32>
    %136 = arith.select %135, %133, %67 : vector<16x16xi1>, vector<16x16xf32>
    %cst_57 = arith.constant dense<0xFF800000> : vector<16xf32>
    %137 = vector.multi_reduction <maximumf>, %136, %cst_57 [1] : vector<16x16xf32> to vector<16xf32>
    %138 = vector.shape_cast %137 : vector<16xf32> to vector<16x1xf32>
    %139 = vector.broadcast %138 : vector<16x1xf32> to vector<16x16xf32>
    %140 = arith.subf %136, %139 : vector<16x16xf32>
    %141 = math.exp %140 : vector<16x16xf32>
    %cst_58 = arith.constant dense<0.000000e+00> : vector<16xf32>
    %142 = vector.multi_reduction <add>, %141, %cst_58 [1] : vector<16x16xf32> to vector<16xf32>
    %143 = vector.shape_cast %142 : vector<16xf32> to vector<16x1xf32>
    %144 = vector.broadcast %143 : vector<16x1xf32> to vector<16x16xf32>
    %145 = arith.divf %141, %144 : vector<16x16xf32>
    %cst_59 = arith.constant dense<0.000000e+00> : vector<16x8xf32>
    %146 = tpu.matmul %145, %130, %cst_59 {dimension_numbers = #tpu.dot_dimension_numbers<[1], [0], [0], [1], [0, 0, 1, 1], [], []>} : vector<16x16xf32>, vector<16x8xf32>, vector<16x8xf32> -> vector<16x8xf32>
    %c0_60 = arith.constant 0 : index
    %c24 = arith.constant 24 : index
    %147 = vector.load %arg17[%c0_60, %c24] : memref<16x32xf32, #tpu.memory_space<vmem>>, vector<16x8xf32>
    tpu.vector_store %arg17[%c0_60, %c24], %146 {strides = array<i32>} : memref<16x32xf32, #tpu.memory_space<vmem>>, vector<16x8xf32>,
    %c0_61 = arith.constant 0 : index
    %c0_62 = arith.constant 0 : index
    %148 = vector.load %arg17[%c0_61, %c0_62] : memref<16x32xf32, #tpu.memory_space<vmem>>, vector<16x32xf32>
    %cst_63 = arith.constant dense<0.000000e+00> : vector<16xf32>
    %149 = vector.multi_reduction <add>, %148, %cst_63 [1] : vector<16x32xf32> to vector<16xf32>
    %150 = vector.shape_cast %149 : vector<16xf32> to vector<16x1xf32>
    %cst_64 = arith.constant 3.200000e+01 : f32
    %151 = vector.broadcast %cst_64 : f32 to vector<16x1xf32>
    %152 = arith.divf %150, %151 : vector<16x1xf32>
    %153 = vector.broadcast %152 : vector<16x1xf32> to vector<16x32xf32>
    %154 = arith.subf %148, %153 : vector<16x32xf32>
    %155 = arith.mulf %154, %154 : vector<16x32xf32>
    %cst_65 = arith.constant dense<0.000000e+00> : vector<16xf32>
    %156 = vector.multi_reduction <add>, %155, %cst_65 [1] : vector<16x32xf32> to vector<16xf32>
    %157 = vector.shape_cast %156 : vector<16xf32> to vector<16x1xf32>
    %cst_66 = arith.constant 3.200000e+01 : f32
    %158 = vector.broadcast %cst_66 : f32 to vector<16x1xf32>
    %159 = arith.divf %157, %158 : vector<16x1xf32>
    %cst_67 = arith.constant 9.99999974E-6 : f32
    %160 = vector.broadcast %cst_67 : f32 to vector<16x1xf32>
    %161 = arith.addf %159, %160 : vector<16x1xf32>
    %162 = math.rsqrt %161 : vector<16x1xf32>
    %163 = vector.broadcast %162 : vector<16x1xf32> to vector<16x32xf32>
    %164 = arith.mulf %154, %163 : vector<16x32xf32>
    %165 = math.absf %164 : vector<16x32xf32>
    %cst_68 = arith.constant dense<0xFF800000> : vector<16xf32>
    %166 = vector.multi_reduction <maximumf>, %165, %cst_68 [1] : vector<16x32xf32> to vector<16xf32>
    %167 = vector.shape_cast %166 : vector<16xf32> to vector<16x1xf32>
    %cst_69 = arith.constant dense<0xFF800000> : vector<1xf32>
    %168 = vector.multi_reduction <maximumf>, %167, %cst_69 [0] : vector<16x1xf32> to vector<1xf32>
    %169 = vector.shape_cast %168 : vector<1xf32> to vector<1x1xf32>
    %cst_70 = arith.constant 1.280000e+02 : f32
    %170 = vector.broadcast %cst_70 : f32 to vector<1x1xf32>
    %171 = arith.divf %170, %169 : vector<1x1xf32>
    %172 = vector.broadcast %171 : vector<1x1xf32> to vector<16x32xf32>
    %173 = arith.mulf %164, %172 : vector<16x32xf32>
    %174 = math.roundeven %173 : vector<16x32xf32>
    %175 = arith.truncf %174 : vector<16x32xf32> to vector<16x32xbf16>
    %c0_71 = arith.constant 0 : index
    %c0_72 = arith.constant 0 : index
    %c0_73 = arith.constant 0 : index
    %176 = vector.load %arg7[%c0_71, %c0_72, %c0_73] : memref<1x32x32xbf16, #tpu.memory_space<vmem>>, vector<1x32x32xbf16>
    %177 = vector.shape_cast %176 : vector<1x32x32xbf16> to vector<32x32xbf16>
    %cst_74 = arith.constant dense<0.000000e+00> : vector<16x32xf32>
    %178 = tpu.matmul %175, %177, %cst_74 {dimension_numbers = #tpu.dot_dimension_numbers<[1], [0], [0], [1], [0, 0, 1, 1], [], []>} : vector<16x32xbf16>, vector<32x32xbf16>, vector<16x32xf32> -> vector<16x32xf32>
    %cst_75 = arith.constant 1.280000e+02 : f32
    %179 = vector.broadcast %cst_75 : f32 to vector<1x1xf32>
    %180 = arith.divf %169, %179 : vector<1x1xf32>
    %181 = vector.broadcast %180 : vector<1x1xf32> to vector<16x32xf32>
    %182 = arith.mulf %178, %181 : vector<16x32xf32>
    %c0_76 = arith.constant 0 : index
    %c0_77 = arith.constant 0 : index
    %c0_78 = arith.constant 0 : index
    %183 = vector.load %arg11[%c0_76, %c0_77, %c0_78] : memref<1x1x32xf32, #tpu.memory_space<vmem>>, vector<1x1x32xf32>
    %184 = vector.shape_cast %183 : vector<1x1x32xf32> to vector<1x32xf32>
    %185 = vector.broadcast %184 : vector<1x32xf32> to vector<16x32xf32>
    %186 = arith.mulf %182, %185 : vector<16x32xf32>
    %187 = arith.addf %3, %186 : vector<16x32xf32>
    %cst_79 = arith.constant dense<0.000000e+00> : vector<16xf32>
    %188 = vector.multi_reduction <add>, %187, %cst_79 [1] : vector<16x32xf32> to vector<16xf32>
    %189 = vector.shape_cast %188 : vector<16xf32> to vector<16x1xf32>
    %cst_80 = arith.constant 3.200000e+01 : f32
    %190 = vector.broadcast %cst_80 : f32 to vector<16x1xf32>
    %191 = arith.divf %189, %190 : vector<16x1xf32>
    %192 = vector.broadcast %191 : vector<16x1xf32> to vector<16x32xf32>
    %193 = arith.subf %187, %192 : vector<16x32xf32>
    %194 = arith.mulf %193, %193 : vector<16x32xf32>
    %cst_81 = arith.constant dense<0.000000e+00> : vector<16xf32>
    %195 = vector.multi_reduction <add>, %194, %cst_81 [1] : vector<16x32xf32> to vector<16xf32>
    %196 = vector.shape_cast %195 : vector<16xf32> to vector<16x1xf32>
    %cst_82 = arith.constant 3.100000e+01 : f32
    %197 = vector.broadcast %cst_82 : f32 to vector<16x1xf32>
    %198 = arith.divf %196, %197 : vector<16x1xf32>
    %199 = math.sqrt %198 : vector<16x1xf32>
    %200 = vector.broadcast %5 : vector<1x32xf32> to vector<16x32xf32>
    %201 = arith.mulf %200, %193 : vector<16x32xf32>
    %cst_83 = arith.constant 9.99999974E-6 : f32
    %202 = vector.broadcast %cst_83 : f32 to vector<16x1xf32>
    %203 = arith.addf %199, %202 : vector<16x1xf32>
    %204 = vector.broadcast %203 : vector<16x1xf32> to vector<16x32xf32>
    %205 = arith.divf %201, %204 : vector<16x32xf32>
    %206 = vector.broadcast %7 : vector<1x32xf32> to vector<16x32xf32>
    %207 = arith.addf %205, %206 : vector<16x32xf32>
    %cst_84 = arith.constant dense<0.000000e+00> : vector<16xf32>
    %208 = vector.multi_reduction <add>, %207, %cst_84 [1] : vector<16x32xf32> to vector<16xf32>
    %209 = vector.shape_cast %208 : vector<16xf32> to vector<16x1xf32>
    %cst_85 = arith.constant 3.200000e+01 : f32
    %210 = vector.broadcast %cst_85 : f32 to vector<16x1xf32>
    %211 = arith.divf %209, %210 : vector<16x1xf32>
    %212 = vector.broadcast %211 : vector<16x1xf32> to vector<16x32xf32>
    %213 = arith.subf %207, %212 : vector<16x32xf32>
    %214 = arith.mulf %213, %213 : vector<16x32xf32>
    %cst_86 = arith.constant dense<0.000000e+00> : vector<16xf32>
    %215 = vector.multi_reduction <add>, %214, %cst_86 [1] : vector<16x32xf32> to vector<16xf32>
    %216 = vector.shape_cast %215 : vector<16xf32> to vector<16x1xf32>
    %cst_87 = arith.constant 3.200000e+01 : f32
    %217 = vector.broadcast %cst_87 : f32 to vector<16x1xf32>
    %218 = arith.divf %216, %217 : vector<16x1xf32>
    %cst_88 = arith.constant 9.99999974E-6 : f32
    %219 = vector.broadcast %cst_88 : f32 to vector<16x1xf32>
    %220 = arith.addf %218, %219 : vector<16x1xf32>
    %221 = math.rsqrt %220 : vector<16x1xf32>
    %222 = vector.broadcast %221 : vector<16x1xf32> to vector<16x32xf32>
    %223 = arith.mulf %213, %222 : vector<16x32xf32>
    %cst_89 = arith.constant dense<0x7F800000> : vector<16xf32>
    %224 = vector.multi_reduction <minimumf>, %223, %cst_89 [1] : vector<16x32xf32> to vector<16xf32>
    %225 = vector.shape_cast %224 : vector<16xf32> to vector<16x1xf32>
    %cst_90 = arith.constant dense<0x7F800000> : vector<1xf32>
    %226 = vector.multi_reduction <minimumf>, %225, %cst_90 [0] : vector<16x1xf32> to vector<1xf32>
    %227 = vector.shape_cast %226 : vector<1xf32> to vector<1x1xf32>
    %228 = vector.broadcast %227 : vector<1x1xf32> to vector<16x32xf32>
    %229 = arith.subf %223, %228 : vector<16x32xf32>
    %230 = math.absf %229 : vector<16x32xf32>
    %cst_91 = arith.constant dense<0xFF800000> : vector<16xf32>
    %231 = vector.multi_reduction <maximumf>, %230, %cst_91 [1] : vector<16x32xf32> to vector<16xf32>
    %232 = vector.shape_cast %231 : vector<16xf32> to vector<16x1xf32>
    %cst_92 = arith.constant dense<0xFF800000> : vector<1xf32>
    %233 = vector.multi_reduction <maximumf>, %232, %cst_92 [0] : vector<16x1xf32> to vector<1xf32>
    %234 = vector.shape_cast %233 : vector<1xf32> to vector<1x1xf32>
    %cst_93 = arith.constant 1.280000e+02 : f32
    %235 = vector.broadcast %cst_93 : f32 to vector<1x1xf32>
    %236 = arith.divf %235, %234 : vector<1x1xf32>
    %237 = vector.broadcast %236 : vector<1x1xf32> to vector<16x32xf32>
    %238 = arith.mulf %229, %237 : vector<16x32xf32>
    %239 = math.roundeven %238 : vector<16x32xf32>
    %240 = arith.truncf %239 : vector<16x32xf32> to vector<16x32xbf16>
    %c0_94 = arith.constant 0 : index
    %c0_95 = arith.constant 0 : index
    %c0_96 = arith.constant 0 : index
    %241 = vector.load %arg8[%c0_94, %c0_95, %c0_96] : memref<1x32x64xbf16, #tpu.memory_space<vmem>>, vector<1x32x64xbf16>
    %242 = vector.shape_cast %241 : vector<1x32x64xbf16> to vector<32x64xbf16>
    %cst_97 = arith.constant dense<0.000000e+00> : vector<16x64xf32>
    %243 = tpu.matmul %240, %242, %cst_97 {dimension_numbers = #tpu.dot_dimension_numbers<[1], [0], [0], [1], [0, 0, 1, 1], [], []>} : vector<16x32xbf16>, vector<32x64xbf16>, vector<16x64xf32> -> vector<16x64xf32>
    %cst_98 = arith.constant 1.280000e+02 : f32
    %244 = vector.broadcast %cst_98 : f32 to vector<1x1xf32>
    %245 = arith.divf %234, %244 : vector<1x1xf32>
    %246 = vector.broadcast %245 : vector<1x1xf32> to vector<16x64xf32>
    %247 = arith.mulf %243, %246 : vector<16x64xf32>
    %248 = vector.broadcast %227 : vector<1x1xf32> to vector<16x64xf32>
    %249 = arith.addf %247, %248 : vector<16x64xf32>
    %c0_99 = arith.constant 0 : index
    %c0_100 = arith.constant 0 : index
    %c0_101 = arith.constant 0 : index
    %250 = vector.load %arg12[%c0_99, %c0_100, %c0_101] : memref<1x1x64xf32, #tpu.memory_space<vmem>>, vector<1x1x64xf32>
    %251 = vector.shape_cast %250 : vector<1x1x64xf32> to vector<1x64xf32>
    %252 = vector.broadcast %251 : vector<1x64xf32> to vector<16x64xf32>
    %253 = arith.mulf %249, %252 : vector<16x64xf32>
    %c0_102 = arith.constant 0 : index
    %c0_103 = arith.constant 0 : index
    %c0_104 = arith.constant 0 : index
    %254 = vector.load %arg14[%c0_102, %c0_103, %c0_104] : memref<1x1x64xf32, #tpu.memory_space<vmem>>, vector<1x1x64xf32>
    %255 = vector.shape_cast %254 : vector<1x1x64xf32> to vector<1x64xf32>
    %256 = vector.broadcast %255 : vector<1x64xf32> to vector<16x64xf32>
    %257 = arith.addf %253, %256 : vector<16x64xf32>
    %cst_105 = arith.constant 5.000000e-01 : f32
    %258 = vector.broadcast %cst_105 : f32 to vector<16x64xf32>
    %259 = arith.mulf %258, %257 : vector<16x64xf32>
    %cst_106 = arith.constant 0.707106769 : f32
    %260 = vector.broadcast %cst_106 : f32 to vector<16x64xf32>
    %261 = arith.mulf %257, %260 : vector<16x64xf32>
    %cst_107 = arith.constant 0.000000e+00 : f32
    %262 = vector.broadcast %cst_107 : f32 to vector<16x64xf32>
    %263 = arith.cmpf olt, %261, %262 : vector<16x64xf32>
    %cst_108 = arith.constant -1.000000e+00 : f32
    %cst_109 = arith.constant 1.000000e+00 : f32
    %264 = vector.broadcast %cst_108 : f32 to vector<16x64xf32>
    %265 = vector.broadcast %cst_109 : f32 to vector<16x64xf32>
    %266 = arith.select %263, %264, %265 : vector<16x64xi1>, vector<16x64xf32>
    %267 = math.absf %261 : vector<16x64xf32>
    %cst_110 = arith.constant 0.327591091 : f32
    %268 = vector.broadcast %cst_110 : f32 to vector<16x64xf32>
    %269 = arith.mulf %268, %267 : vector<16x64xf32>
    %cst_111 = arith.constant 1.000000e+00 : f32
    %270 = vector.broadcast %cst_111 : f32 to vector<16x64xf32>
    %271 = arith.addf %270, %269 : vector<16x64xf32>
    %cst_112 = arith.constant 1.000000e+00 : f32
    %272 = vector.broadcast %cst_112 : f32 to vector<16x64xf32>
    %273 = arith.divf %272, %271 : vector<16x64xf32>
    %cst_113 = arith.constant 1.06140542 : f32
    %274 = vector.broadcast %cst_113 : f32 to vector<16x64xf32>
    %275 = arith.mulf %274, %273 : vector<16x64xf32>
    %cst_114 = arith.constant -1.45315206 : f32
    %276 = vector.broadcast %cst_114 : f32 to vector<16x64xf32>
    %277 = arith.addf %275, %276 : vector<16x64xf32>
    %278 = arith.mulf %277, %273 : vector<16x64xf32>
    %cst_115 = arith.constant 1.42141378 : f32
    %279 = vector.broadcast %cst_115 : f32 to vector<16x64xf32>
    %280 = arith.addf %278, %279 : vector<16x64xf32>
    %281 = arith.mulf %280, %273 : vector<16x64xf32>
    %cst_116 = arith.constant -0.284496725 : f32
    %282 = vector.broadcast %cst_116 : f32 to vector<16x64xf32>
    %283 = arith.addf %281, %282 : vector<16x64xf32>
    %284 = arith.mulf %283, %273 : vector<16x64xf32>
    %cst_117 = arith.constant 0.254829586 : f32
    %285 = vector.broadcast %cst_117 : f32 to vector<16x64xf32>
    %286 = arith.addf %284, %285 : vector<16x64xf32>
    %287 = arith.mulf %286, %273 : vector<16x64xf32>
    %cst_118 = arith.constant 0.000000e+00 : f32
    %288 = vector.broadcast %cst_118 : f32 to vector<16x64xf32>
    %289 = arith.subf %288, %267 : vector<16x64xf32>
    %290 = arith.mulf %289, %267 : vector<16x64xf32>
    %291 = math.exp %290 : vector<16x64xf32>
    %292 = arith.mulf %287, %291 : vector<16x64xf32>
    %cst_119 = arith.constant 1.000000e+00 : f32
    %293 = vector.broadcast %cst_119 : f32 to vector<16x64xf32>
    %294 = arith.subf %293, %292 : vector<16x64xf32>
    %295 = arith.mulf %266, %294 : vector<16x64xf32>
    %cst_120 = arith.constant 1.000000e+00 : f32
    %296 = vector.broadcast %cst_120 : f32 to vector<16x64xf32>
    %297 = arith.addf %296, %295 : vector<16x64xf32>
    %298 = arith.mulf %259, %297 : vector<16x64xf32>
    %cst_121 = arith.constant dense<0.000000e+00> : vector<16xf32>
    %299 = vector.multi_reduction <add>, %298, %cst_121 [1] : vector<16x64xf32> to vector<16xf32>
    %300 = vector.shape_cast %299 : vector<16xf32> to vector<16x1xf32>
    %cst_122 = arith.constant 6.400000e+01 : f32
    %301 = vector.broadcast %cst_122 : f32 to vector<16x1xf32>
    %302 = arith.divf %300, %301 : vector<16x1xf32>
    %303 = vector.broadcast %302 : vector<16x1xf32> to vector<16x64xf32>
    %304 = arith.subf %298, %303 : vector<16x64xf32>
    %305 = arith.mulf %304, %304 : vector<16x64xf32>
    %cst_123 = arith.constant dense<0.000000e+00> : vector<16xf32>
    %306 = vector.multi_reduction <add>, %305, %cst_123 [1] : vector<16x64xf32> to vector<16xf32>
    %307 = vector.shape_cast %306 : vector<16xf32> to vector<16x1xf32>
    %cst_124 = arith.constant 6.400000e+01 : f32
    %308 = vector.broadcast %cst_124 : f32 to vector<16x1xf32>
    %309 = arith.divf %307, %308 : vector<16x1xf32>
    %cst_125 = arith.constant 9.99999974E-6 : f32
    %310 = vector.broadcast %cst_125 : f32 to vector<16x1xf32>
    %311 = arith.addf %309, %310 : vector<16x1xf32>
    %312 = math.rsqrt %311 : vector<16x1xf32>
    %313 = vector.broadcast %312 : vector<16x1xf32> to vector<16x64xf32>
    %314 = arith.mulf %304, %313 : vector<16x64xf32>
    %315 = math.absf %314 : vector<16x64xf32>
    %cst_126 = arith.constant dense<0xFF800000> : vector<16xf32>
    %316 = vector.multi_reduction <maximumf>, %315, %cst_126 [1] : vector<16x64xf32> to vector<16xf32>
    %317 = vector.shape_cast %316 : vector<16xf32> to vector<16x1xf32>
    %cst_127 = arith.constant dense<0xFF800000> : vector<1xf32>
    %318 = vector.multi_reduction <maximumf>, %317, %cst_127 [0] : vector<16x1xf32> to vector<1xf32>
    %319 = vector.shape_cast %318 : vector<1xf32> to vector<1x1xf32>
    %cst_128 = arith.constant 1.280000e+02 : f32
    %320 = vector.broadcast %cst_128 : f32 to vector<1x1xf32>
    %321 = arith.divf %320, %319 : vector<1x1xf32>
    %322 = vector.broadcast %321 : vector<1x1xf32> to vector<16x64xf32>
    %323 = arith.mulf %314, %322 : vector<16x64xf32>
    %324 = math.roundeven %323 : vector<16x64xf32>
    %325 = arith.truncf %324 : vector<16x64xf32> to vector<16x64xbf16>
    %c0_129 = arith.constant 0 : index
    %c0_130 = arith.constant 0 : index
    %c0_131 = arith.constant 0 : index
    %326 = vector.load %arg9[%c0_129, %c0_130, %c0_131] : memref<1x64x32xbf16, #tpu.memory_space<vmem>>, vector<1x64x32xbf16>
    %327 = vector.shape_cast %326 : vector<1x64x32xbf16> to vector<64x32xbf16>
    %cst_132 = arith.constant dense<0.000000e+00> : vector<16x32xf32>
    %328 = tpu.matmul %325, %327, %cst_132 {dimension_numbers = #tpu.dot_dimension_numbers<[1], [0], [0], [1], [0, 0, 1, 1], [], []>} : vector<16x64xbf16>, vector<64x32xbf16>, vector<16x32xf32> -> vector<16x32xf32>
    %cst_133 = arith.constant 1.280000e+02 : f32
    %329 = vector.broadcast %cst_133 : f32 to vector<1x1xf32>
    %330 = arith.divf %319, %329 : vector<1x1xf32>
    %331 = vector.broadcast %330 : vector<1x1xf32> to vector<16x32xf32>
    %332 = arith.mulf %328, %331 : vector<16x32xf32>
    %c0_134 = arith.constant 0 : index
    %c0_135 = arith.constant 0 : index
    %c0_136 = arith.constant 0 : index
    %333 = vector.load %arg13[%c0_134, %c0_135, %c0_136] : memref<1x1x32xf32, #tpu.memory_space<vmem>>, vector<1x1x32xf32>
    %334 = vector.shape_cast %333 : vector<1x1x32xf32> to vector<1x32xf32>
    %335 = vector.broadcast %334 : vector<1x32xf32> to vector<16x32xf32>
    %336 = arith.mulf %332, %335 : vector<16x32xf32>
    %c0_137 = arith.constant 0 : index
    %c0_138 = arith.constant 0 : index
    %c0_139 = arith.constant 0 : index
    %337 = vector.load %arg15[%c0_137, %c0_138, %c0_139] : memref<1x1x32xf32, #tpu.memory_space<vmem>>, vector<1x1x32xf32>
    %338 = vector.shape_cast %337 : vector<1x1x32xf32> to vector<1x32xf32>
    %339 = vector.broadcast %338 : vector<1x32xf32> to vector<16x32xf32>
    %340 = arith.addf %336, %339 : vector<16x32xf32>
    %341 = arith.addf %187, %340 : vector<16x32xf32>
    %c0_140 = arith.constant 0 : index
    %c0_141 = arith.constant 0 : index
    %342 = vector.load %arg16[%c0_140, %c0_141] : memref<16x32xf32, #tpu.memory_space<vmem>>, vector<16x32xf32>
    tpu.vector_store %arg16[%c0_140, %c0_141], %341 {strides = array<i32>} : memref<16x32xf32, #tpu.memory_space<vmem>>, vector<16x32xf32>,
    return
  }
  func.func @transform_0(%arg0: i32) -> (i32, i32) {
    %c0_i32 = arith.constant 0 : i32
    %c0_i32_0 = arith.constant 0 : i32
    %c0_i32_1 = arith.constant 0 : i32
    return %c0_i32, %c0_i32_0 : i32, i32
  }
  func.func @transform_1(%arg0: i32) -> (i32, i32) {
    %c0_i32 = arith.constant 0 : i32
    %c0_i32_0 = arith.constant 0 : i32
    %c0_i32_1 = arith.constant 0 : i32
    return %c0_i32, %c0_i32_0 : i32, i32
  }
  func.func @transform_2(%arg0: i32) -> (i32, i32) {
    %c0_i32 = arith.constant 0 : i32
    %c0_i32_0 = arith.constant 0 : i32
    %c0_i32_1 = arith.constant 0 : i32
    return %c0_i32, %c0_i32_0 : i32, i32
  }
  func.func @transform_3(%arg0: i32) -> (i32, i32, i32) {
    %c0_i32 = arith.constant 0 : i32
    %c0_i32_0 = arith.constant 0 : i32
    %c0_i32_1 = arith.constant 0 : i32
    return %arg0, %c0_i32, %c0_i32_0 : i32, i32, i32
  }
  func.func @transform_4(%arg0: i32) -> (i32, i32, i32) {
    %c0_i32 = arith.constant 0 : i32
    %c0_i32_0 = arith.constant 0 : i32
    %c0_i32_1 = arith.constant 0 : i32
    return %arg0, %c0_i32, %c0_i32_0 : i32, i32, i32
  }
  func.func @transform_5(%arg0: i32) -> (i32, i32, i32) {
    %c0_i32 = arith.constant 0 : i32
    %c0_i32_0 = arith.constant 0 : i32
    %c0_i32_1 = arith.constant 0 : i32
    return %arg0, %c0_i32, %c0_i32_0 : i32, i32, i32
  }
  func.func @transform_6(%arg0: i32) -> (i32, i32, i32) {
    %c0_i32 = arith.constant 0 : i32
    %c0_i32_0 = arith.constant 0 : i32
    %c0_i32_1 = arith.constant 0 : i32
    return %arg0, %c0_i32, %c0_i32_0 : i32, i32, i32
  }
  func.func @transform_7(%arg0: i32) -> (i32, i32, i32) {
    %c0_i32 = arith.constant 0 : i32
    %c0_i32_0 = arith.constant 0 : i32
    %c0_i32_1 = arith.constant 0 : i32
    return %arg0, %c0_i32, %c0_i32_0 : i32, i32, i32
  }
  func.func @transform_8(%arg0: i32) -> (i32, i32, i32) {
    %c0_i32 = arith.constant 0 : i32
    %c0_i32_0 = arith.constant 0 : i32
    %c0_i32_1 = arith.constant 0 : i32
    return %arg0, %c0_i32, %c0_i32_0 : i32, i32, i32
  }
  func.func @transform_9(%arg0: i32) -> (i32, i32, i32) {
    %c0_i32 = arith.constant 0 : i32
    %c0_i32_0 = arith.constant 0 : i32
    %c0_i32_1 = arith.constant 0 : i32
    return %arg0, %c0_i32, %c0_i32_0 : i32, i32, i32
  }
  func.func @transform_10(%arg0: i32) -> (i32, i32, i32) {
    %c0_i32 = arith.constant 0 : i32
    %c0_i32_0 = arith.constant 0 : i32
    %c0_i32_1 = arith.constant 0 : i32
    return %arg0, %c0_i32, %c0_i32_0 : i32, i32, i32
  }
  func.func @transform_11(%arg0: i32) -> (i32, i32, i32) {
    %c0_i32 = arith.constant 0 : i32
    %c0_i32_0 = arith.constant 0 : i32
    %c0_i32_1 = arith.constant 0 : i32
    return %arg0, %c0_i32, %c0_i32_0 : i32, i32, i32
  }
  func.func @transform_12(%arg0: i32) -> (i32, i32, i32) {
    %c0_i32 = arith.constant 0 : i32
    %c0_i32_0 = arith.constant 0 : i32
    %c0_i32_1 = arith.constant 0 : i32
    return %arg0, %c0_i32, %c0_i32_0 : i32, i32, i32
  }
  func.func @transform_13(%arg0: i32) -> (i32, i32, i32) {
    %c0_i32 = arith.constant 0 : i32
    %c0_i32_0 = arith.constant 0 : i32
    %c0_i32_1 = arith.constant 0 : i32
    return %arg0, %c0_i32, %c0_i32_0 : i32, i32, i32
  }
  func.func @transform_14(%arg0: i32) -> (i32, i32, i32) {
    %c0_i32 = arith.constant 0 : i32
    %c0_i32_0 = arith.constant 0 : i32
    %c0_i32_1 = arith.constant 0 : i32
    return %arg0, %c0_i32, %c0_i32_0 : i32, i32, i32
  }
  func.func @transform_15(%arg0: i32) -> (i32, i32) {
    %c0_i32 = arith.constant 0 : i32
    %c0_i32_0 = arith.constant 0 : i32
    %c0_i32_1 = arith.constant 0 : i32
    return %c0_i32, %c0_i32_0 : i32, i32
  }
}

</mosaic_0001>

<bundles_post_ra>
// kernel: encoder_forward.1
= control target key start
LH: loop header
LB: loop body
LE: loop exit
PB: predicated region body
PF: predicated region fallthrough
CT: control target
= control target key end

     0   :  { %s3050_s0 = inlined_call_operand.vmem [shape: f32[16,32], index: 0, kind: input, shape index: {}]   ;;  %s3051_s1 = inlined_call_operand.vmem [shape: f32[16,16], index: 1, kind: input, shape index: {}]   ;;  %s3052_s2 = inlined_call_operand.vmem [shape: f32[16,16], index: 2, kind: input, shape index: {}]   ;;  %s3053_s3 = inlined_call_operand.vmem [shape: f32[2,1,32], index: 3, kind: input, shape index: {}]   ;;  %s3054_s4 = inlined_call_operand.vmem [shape: f32[2,1,32], index: 4, kind: input, shape index: {}]   ;;  %s3055_s5 = inlined_call_operand.vmem [shape: bf16[2,32,96], index: 5, kind: input, shape index: {}]   ;;  %s3056_s6 = inlined_call_operand.vmem [shape: bf16[2,32,32], index: 6, kind: input, shape index: {}]   ;;  %s3057_s7 = inlined_call_operand.vmem [shape: bf16[2,32,64], index: 7, kind: input, shape index: {}]   ;;  %s3058_s8 = inlined_call_operand.vmem [shape: bf16[2,64,32], index: 8, kind: input, shape index: {}]   ;;  %s3059_s9 = inlined_call_operand.vmem [shape: f32[2,1,96], index: 9, kind: input, shape index: {}]   ;;  %s3060_s10 = inlined_call_operand.vmem [shape: f32[2,1,32], index: 10, kind: input, shape index: {}]   ;;  %s3061_s11 = inlined_call_operand.vmem [shape: f32[2,1,64], index: 11, kind: input, shape index: {}]   ;;  %s3062_s12 = inlined_call_operand.vmem [shape: f32[2,1,32], index: 12, kind: input, shape index: {}]   ;;  %s3063_s13 = inlined_call_operand.vmem [shape: f32[2,1,64], index: 13, kind: input, shape index: {}]   ;;  %s3064_s14 = inlined_call_operand.vmem [shape: f32[2,1,32], index: 14, kind: input, shape index: {}]   ;;  %s3065_s15 = inlined_call_operand.hbm [shape: f32[16,32], index: 15, kind: output, shape index: {}]  }
   0x1   :  { %3070 = sst [smem:[#allocation8_spill]] %s3051_s1 }
   0x2   :  { %3071 = sst [smem:[#allocation9_spill]] %s3052_s2 }
   0x3   :  { %3072 = sst [smem:[#allocation10_spill]] %s3053_s3 }
   0x4   :  { %3073 = sst [smem:[#allocation11_spill]] %s3054_s4 }
   0x5   :  { %3074 = sst [smem:[#allocation12_spill]] %s3055_s5 }
   0x6   :  { %3075 = sst [smem:[#allocation13_spill]] %s3056_s6 }
   0x7   :  { %3076 = sst [smem:[#allocation14_spill]] %s3057_s7 }
   0x8   :  { %3077 = sst [smem:[#allocation15_spill]] %s3058_s8 }
   0x9   :  { %3078 = sst [smem:[#allocation16_spill]] %s3065_s15 }
   0xa   :  { %20 = vsyncpa [#allocation4], 0  ;;  %s2653_s18 = smov 0  }
   0xb LB: > { %3079 = sst [smem:[#allocation6_spill]] %s2549_s18  ;;  %s2659_s19 = sadd.s32 4294967295, %s2549_s18   ;;  %s2549_s18 = sphi %s2653_s18, %s26_s18  }
   0xc   : > { %p2193_p0 = scmp.ge.s32.totalorder %s2549_s18, 1  ;;  %p527_p1 = scmp.lt.s32.totalorder %s2549_s18, 3 }
   0xe   : > { %p528_p2 = pnand %p2193_p0, %p527_p1 }
  0x10   : > { %531 = sbr.rel (%p528_p2) target bundleno = 3955 (0xf73), region = 80 }
  0x15   : > { %p609_p3 = scmp.lt.s32.totalorder %s2659_s19, 1  ;;  %s3080_s3 = sld [smem:[#allocation10_spill]] }
  0x16   : > { %s3081_s4 = sld [smem:[#allocation11_spill]]  ;;  %p2202_p4 = scmp.ne.s32.totalorder %s2659_s19, 0 }
  0x17   : > { %s2665_s20 = scalar_select %p609_p3, %s2659_s19, 1 }
  0x18   : > { %s3082_s5 = sld [smem:[#allocation12_spill]] }
  0x19   : > { %s2275_s27 = sshll.u32 %s2665_s20, 4  ;;  %s2278_s28 = sshll.u32 %s2665_s20, 5 }
  0x1a   : > { %s3083_s6 = sld [smem:[#allocation13_spill]]  ;;  %s637_s29 = scalar_lea.vmem %s3059_s9, %s2665_s20 }
  0x1b   : > { %s2671_s23 = scalar_lea.vmem %s3080_s3, %s2665_s20  ;;  %s3085_s7 = sld [smem:[#allocation14_spill]] }
  0x1c   : > { %s2677_s26 = scalar_lea.vmem %s3081_s4, %s2665_s20  ;;  %s3086_s8 = sld [smem:[#allocation15_spill]] }
  0x1d   : > { %s640_s17 = scalar_lea.vmem %s3060_s10, %s2665_s20  ;;  %s652_s1 = scalar_lea.vmem %s3064_s14, %s2665_s20 }
  0x1e   : > { %s2684_s16 = scalar_lea.vmem %s3082_s5, %s2275_s27 }
  0x1f   : > { %657 = sbr.rel (%p2202_p4) target bundleno = 39 (0x27), region = 84 }
  0x20   : > { %s2689_s22 = scalar_lea.vmem %s3083_s6, %s2275_s27 }
  0x21   : > { %3084 = sst [smem:[#allocation7_spill]] %s2689_s22  ;;  %s2694_s15 = scalar_lea.vmem %s3085_s7, %s2275_s27 }
  0x22   : > { %s2699_s4 = scalar_lea.vmem %s3086_s8, %s2278_s28  ;;  %s643_s22 = scalar_lea.vmem %s3061_s11, %s2665_s20 }
  0x23   : > { %s646_s27 = scalar_lea.vmem %s3062_s12, %s2665_s20  ;;  %s649_s28 = scalar_lea.vmem %s3063_s13, %s2665_s20 }
  0x24   : > { %v658_v0 = vld [vmem:[%s3050_s0] sm:$0xff]  ;;  %vm660_vm0 = vcmask 261120   ;;  %v659_v1 = vld [vmem:[%s3050_s0 + $0x8] sm:$0xff] }
  0x25   : > { %661 = vst.msk [vmem:[#allocation3] sm:$0xff] %vm660_vm0, %v658_v0 }
  0x26   : > { %662 = vst.msk [vmem:[#allocation3 + $0x8] sm:$0xff] %vm660_vm0, %v659_v1 }
  0x27 PF: > { %vm667_vm1 = vcmask 261120   ;;  %v2551_v6 = vmov 32.0   ;;  %v2552_v23 = vmov 31.0   ;;  %v2409_v60 = vld [vmem:[%s2671_s23] ss:$0 sm:$0xff]  ;;  %s2555_s21 = smov 88  }
  0x28   : > { %2417 = vrcp.f32 %v2551_v6  ;;  %s2556_s3 = smov 72   ;;  %s2558_s18 = smov 80  }
  0x29   : > { %2419 = vrcp.f32 %v2552_v23  ;;  %s2559_s24 = smov 104   ;;  %s2560_s25 = smov 112  }
  0x2a   : > { %s3087_s6 = sld [smem:[#allocation8_spill]]  ;;  %s2565_s2 = smov 40  }
  0x2b   : > { %s3088_s8 = sld [smem:[#allocation9_spill]]  ;;  %s2566_s5 = smov 16  }
  0x2c   : > { %v663_v2 = vld [vmem:[#allocation3] sm:$0xff]  ;;  %s2567_s30 = smov 24   ;;  %s2568_s7 = smov 8  }
  0x2d   : > { %v668_v3 = vsel %vm667_vm1, %v663_v2, 0.0  ;;  %v664_v4 = vld [vmem:[#allocation3 + $0x8] sm:$0xff]  ;;  %p2357_p5 = scmp.eq.s32.totalorder %s2659_s19, 1  ;;  %s2572_s20 = smov 128  }
  0x2e   : > { %669 = vadd.xlane.f32.xlu0 %v668_v3  ;;  %v671_v5 = vsel %vm667_vm1, %v664_v4, 0.0  ;;  %v2418_v7 = vpop.eup %2417 }
  0x2f   : > { %v675_v8 = vmul.f32 32.0, %v2418_v7  ;;  %vm679_vm2 = vweird.f32 %v2418_v7  ;;  %v2420_v24 = vpop.eup %2419 }
  0x30   : > { %v694_v25 = vmul.f32 31.0, %v2420_v24  ;;  %vm698_vm3 = vweird.f32 %v2420_v24 }
  0x31   : > { %v676_v9 = vsub.f32 1.0, %v675_v8 }
  0x32   : > { %v695_v26 = vsub.f32 1.0, %v694_v25 }
  0x33   : > { %v677_v10 = vmul.f32 %v2418_v7, %v676_v9 }
  0x34   : > { %v696_v27 = vmul.f32 %v2420_v24, %v695_v26 }
  0x35   : > { %v678_v11 = vadd.f32 %v2418_v7, %v677_v10 }
  0x36   : > { %672 = vadd.xlane.f32.xlu0 %v671_v5  ;;  %v697_v28 = vadd.f32 %v2420_v24, %v696_v27 }
  0x37   : > { %v2734_v12 = vsel %vm679_vm2, %v2418_v7, %v678_v11 }
  0x38   : > { %v2748_v29 = vsel %vm698_vm3, %v2420_v24, %v697_v28 }
  0xa1   : > { %v670_v13 = vpop.xlane.xlu0 %669 }
  0xa2   : > { %v681_v14 = vmul.f32 %v2734_v12, %v670_v13 }
  0xa4   : > { %v2737_v15 = vsub.f32 %v663_v2, %v681_v14 }
  0xa6   : > { %v685_v16 = vmul.f32 %v2737_v15, %v2737_v15  ;;  %v729_v2 = vmul.f32 %v2409_v60, %v2737_v15 }
  0xa8   : > { %v687_v17 = vsel %vm667_vm1, %v685_v16, 0.0 }
  0xa9   : > { %688 = vadd.xlane.f32.xlu1 %v687_v17  ;;  %v673_v18 = vpop.xlane.xlu0 %672 }
  0xaa   : > { %v682_v19 = vmul.f32 %v2734_v12, %v673_v18 }
  0xac   : > { %v2743_v20 = vsub.f32 %v664_v4, %v682_v19  ;;  %v2410_v4 = vld [vmem:[%s2677_s26] ss:$0 sm:$0xff] }
  0xae   : > { %v686_v21 = vmul.f32 %v2743_v20, %v2743_v20  ;;  %v730_v15 = vmul.f32 %v2409_v60, %v2743_v20  ;;  %v2280_v60 = vld [vmem:[%s2684_s16 + $0x8] sm:$0xff] }
  0xaf   : > { %872 = vmatpush.bf16.msra.mxu0 %v2280_v60 }
  0xb0   : > { %v690_v22 = vsel %vm667_vm1, %v686_v21, 0.0 }
  0xb1   : > { %691 = vadd.xlane.f32.xlu1 %v690_v22 }
 0x11c   : > { %v689_v30 = vpop.xlane.xlu1 %688 }
 0x11d   : > { %v700_v31 = vmul.f32 %v2748_v29, %v689_v30 }
 0x11f   : > { %2421 = vrsqrt.f32 %v700_v31  ;;  %vm709_vm4 = vcmp.eq.f32.partialorder %v700_v31, inf  ;;  %v712_v44 = vand.u32 2147483648, %v700_v31  ;;  %vm711_vm5 = vcmp.eq.f32.partialorder %v700_v31, 0.0 }
 0x124   : > { %v692_v32 = vpop.xlane.xlu1 %691 }
 0x125   : > { %v2422_v33 = vpop.eup %2421  ;;  %v701_v34 = vmul.f32 %v2748_v29, %v692_v32 }
 0x126   : > { %v703_v35 = vmul.f32 %v2422_v33, %v700_v31 }
 0x127   : > { %2423 = vrsqrt.f32 %v701_v34  ;;  %vm721_vm6 = vcmp.eq.f32.partialorder %v701_v34, inf  ;;  %v724_v52 = vand.u32 2147483648, %v701_v34  ;;  %vm723_vm7 = vcmp.eq.f32.partialorder %v701_v34, 0.0 }
 0x128   : > { %v704_v36 = vmul.f32 %v2422_v33, %v703_v35 }
 0x12a   : > { %v705_v37 = vmul.f32 0.5, %v704_v36 }
 0x12c   : > { %v706_v38 = vsub.f32 1.5, %v705_v37 }
 0x12d   : > { %v2424_v39 = vpop.eup %2423 }
 0x12e   : > { %v707_v40 = vmul.f32 %v2422_v33, %v706_v38  ;;  %v715_v41 = vmul.f32 %v2424_v39, %v701_v34 }
 0x130   : > { %v708_v42 = vmul.f32 %v707_v40, %v700_v31  ;;  %v716_v43 = vmul.f32 %v2424_v39, %v715_v41 }
 0x132   : > { %v717_v45 = vmul.f32 0.5, %v716_v43  ;;  %v710_v46 = vsel %vm709_vm4, %v700_v31, %v708_v42 }
 0x133   : > { %v713_v47 = vsel %vm711_vm5, %v712_v44, %v710_v46 }
 0x134   : > { %v718_v48 = vsub.f32 1.5, %v717_v45  ;;  %v731_v49 = vadd.f32 1e-05, %v713_v47 }
 0x136   : > { %v719_v50 = vmul.f32 %v2424_v39, %v718_v48  ;;  %2425 = vrcp.f32 %v731_v49  ;;  %v744_v59 = vand.u32 2147483648, %v731_v49  ;;  %v742_v62 = vand.u32 2147483647, %v731_v49 }
 0x137   : > { %vm738_vm9 = vweird.f32 %v731_v49 }
 0x138   : > { %v720_v51 = vmul.f32 %v719_v50, %v701_v34  ;;  %v745_v1 = vor.u32 1.1754944e-38, %v744_v59  ;;  %vm743_vm11 = vcmp.eq.f32.partialorder %v742_v62, 8.507059e+37 }
 0x13a   : > { %v722_v53 = vsel %vm721_vm6, %v701_v34, %v720_v51 }
 0x13b   : > { %v725_v54 = vsel %vm723_vm7, %v724_v52, %v722_v53 }
 0x13c   : > { %v2426_v55 = vpop.eup %2425  ;;  %v732_v56 = vadd.f32 1e-05, %v725_v54 }
 0x13d   : > { %v734_v57 = vmul.f32 %v2426_v55, %v731_v49  ;;  %vm739_vm8 = vweird.f32 %v2426_v55 }
 0x13e   : > { %2427 = vrcp.f32 %v732_v56  ;;  %vm740_vm10 = vmor %vm738_vm9, %vm739_vm8  ;;  %v759_v9 = vand.u32 2147483648, %v732_v56  ;;  %v757_v13 = vand.u32 2147483647, %v732_v56  ;;  %vm753_vm13 = vweird.f32 %v732_v56 }
 0x13f   : > { %v735_v58 = vsub.f32 1.0, %v734_v57 }
 0x140   : > { %v760_v17 = vor.u32 1.1754944e-38, %v759_v9  ;;  %vm758_vm15 = vcmp.eq.f32.partialorder %v757_v13, 8.507059e+37 }
 0x141   : > { %v736_v61 = vmul.f32 %v2426_v55, %v735_v58 }
 0x143   : > { %v737_v63 = vadd.f32 %v2426_v55, %v736_v61  ;;  %v2279_v61 = vld [vmem:[%s2684_s16] sm:$0xff]  ;;  %s2554_s16 = smov 96  }
 0x144   : > { %v2428_v0 = vpop.eup %2427  ;;  %873 = vmatpush.bf16.msra.mxu0 %v2279_v61 }
 0x145   : > { %v741_v3 = vsel %vm740_vm10, %v2426_v55, %v737_v63  ;;  %v749_v5 = vmul.f32 %v2428_v0, %v732_v56  ;;  %vm754_vm12 = vweird.f32 %v2428_v0 }
 0x146   : > { %v746_v6 = vsel %vm743_vm11, %v745_v1, %v741_v3  ;;  %vm755_vm14 = vmor %vm753_vm13, %vm754_vm12 }
 0x147   : > { %v747_v7 = vmul.f32 %v746_v6, %v729_v2  ;;  %v750_v8 = vsub.f32 1.0, %v749_v5 }
 0x149   : > { %v766_v10 = vadd.f32 %v2410_v4, %v747_v7  ;;  %v751_v11 = vmul.f32 %v2428_v0, %v750_v8 }
 0x14b   : > { %v768_v14 = vsel %vm667_vm1, %v766_v10, 0.0  ;;  %v752_v16 = vadd.f32 %v2428_v0, %v751_v11 }
 0x14c   : > { %769 = vadd.xlane.f32.xlu2 %v768_v14 }
 0x14d   : > { %v756_v18 = vsel %vm755_vm14, %v2428_v0, %v752_v16  ;;  %vm906_vm14 = vcmask 64512  }
 0x14e   : > { %v761_v19 = vsel %vm758_vm15, %v760_v17, %v756_v18 }
 0x14f   : > { %v762_v21 = vmul.f32 %v761_v19, %v730_v15 }
 0x151   : > { %v767_v22 = vadd.f32 %v2410_v4, %v762_v21 }
 0x153   : > { %v771_v23 = vsel %vm667_vm1, %v767_v22, 0.0 }
 0x154   : > { %772 = vadd.xlane.f32.xlu2 %v771_v23 }
 0x1bf   : > { %v770_v24 = vpop.xlane.xlu2 %769 }
 0x1c0   : > { %v774_v25 = vmul.f32 %v770_v24, %v2734_v12 }
 0x1c2   : > { %v776_v26 = vsub.f32 %v766_v10, %v774_v25 }
 0x1c4   : > { %v778_v27 = vmul.f32 %v776_v26, %v776_v26 }
 0x1c6   : > { %v780_v28 = vsel %vm667_vm1, %v778_v27, 0.0 }
 0x1c7   : > { %781 = vadd.xlane.f32.xlu0 %v780_v28  ;;  %v773_v30 = vpop.xlane.xlu2 %772 }
 0x1c8   : > { %v775_v31 = vmul.f32 %v773_v30, %v2734_v12 }
 0x1ca   : > { %v777_v20 = vsub.f32 %v767_v22, %v775_v31 }
 0x1cc   : > { %v779_v32 = vmul.f32 %v777_v20, %v777_v20 }
 0x1ce   : > { %v783_v33 = vsel %vm667_vm1, %v779_v32, 0.0 }
 0x1cf   : > { %784 = vadd.xlane.f32.xlu1 %v783_v33 }
 0x23a   : > { %v782_v34 = vpop.xlane.xlu0 %781 }
 0x23b   : > { %v786_v35 = vmul.f32 %v782_v34, %v2734_v12 }
 0x23d   : > { %v788_v36 = vadd.f32 1e-05, %v786_v35 }
 0x23f   : > { %2429 = vrsqrt.f32 %v788_v36  ;;  %vm796_vm2 = vweird.f32 %v788_v36 }
 0x242   : > { %v785_v37 = vpop.xlane.xlu1 %784 }
 0x243   : > { %v787_v38 = vmul.f32 %v785_v37, %v2734_v12  ;;  %v2553_v37 = vmov 128.0  }
 0x245   : > { %v2430_v39 = vpop.eup %2429  ;;  %v789_v40 = vadd.f32 1e-05, %v787_v38 }
 0x246   : > { %v791_v41 = vmul.f32 %v2430_v39, %v788_v36  ;;  %vm797_vm0 = vweird.f32 %v2430_v39 }
 0x247   : > { %2431 = vrsqrt.f32 %v789_v40  ;;  %vm798_vm3 = vmor %vm796_vm2, %vm797_vm0  ;;  %vm806_vm5 = vweird.f32 %v789_v40  ;;  %vm951_vm2 = vcmask 130048  }
 0x248   : > { %v792_v42 = vmul.f32 %v2430_v39, %v791_v41 }
 0x24a   : > { %v793_v43 = vmul.f32 0.5, %v792_v42 }
 0x24c   : > { %v794_v44 = vsub.f32 1.5, %v793_v43 }
 0x24d   : > { %v2432_v45 = vpop.eup %2431 }
 0x24e   : > { %v801_v46 = vmul.f32 %v2432_v45, %v789_v40  ;;  %v795_v47 = vmul.f32 %v2430_v39, %v794_v44  ;;  %vm807_vm4 = vweird.f32 %v2432_v45 }
 0x24f   : > { %vm808_vm6 = vmor %vm806_vm5, %vm807_vm4 }
 0x250   : > { %v802_v48 = vmul.f32 %v2432_v45, %v801_v46  ;;  %v799_v49 = vsel %vm798_vm3, %v2430_v39, %v795_v47 }
 0x251   : > { %v810_v50 = vmul.f32 %v799_v49, %v776_v26 }
 0x252   : > { %v803_v51 = vmul.f32 0.5, %v802_v48 }
 0x253   : > { %v812_v52 = vand.u32 2147483647, %v810_v50 }
 0x254   : > { %v804_v53 = vsub.f32 1.5, %v803_v51 }
 0x255   : > { %v814_v54 = vsel %vm667_vm1, %v812_v52, -inf }
 0x256   : > { %815 = vmax.xlane.f32.xlu2 %v814_v54  ;;  %v805_v55 = vmul.f32 %v2432_v45, %v804_v53 }
 0x258   : > { %v809_v56 = vsel %vm808_vm6, %v2432_v45, %v805_v55  ;;  %v2411_v45 = vld [vmem:[%s637_s29] ss:$0 sm:$0xff]  ;;  %s2557_s29 = smov 120  }
 0x259   : > { %v811_v57 = vmul.f32 %v809_v56, %v777_v20 }
 0x25b   : > { %v813_v58 = vand.u32 2147483647, %v811_v57 }
 0x25d   : > { %v817_v59 = vsel %vm667_vm1, %v813_v58, -inf }
 0x25e   : > { %818 = vmax.xlane.f32.xlu0 %v817_v59 }
 0x2c9   : > { %v816_v62 = vpop.xlane.xlu2 %815 }
 0x2d1   : > { %v819_v63 = vpop.xlane.xlu0 %818 }
 0x2d2   : > { %v820_v0 = vmax.f32 %v816_v62, %v819_v63 }
 0x2d4   : > { %v821_v1 = vrot.slane %v820_v0, 4 }
 0x2d6   : > { %v822_v2 = vmax.f32 %v820_v0, %v821_v1 }
 0x2d8   : > { %v823_v3 = vrot.slane %v822_v2, 2 }
 0x2da   : > { %v824_v4 = vmax.f32 %v822_v2, %v823_v3  ;;  %v2561_v2 = vmov 2.828427  }
 0x2dc   : > { %v825_v5 = vrot.slane %v824_v4, 1 }
 0x2de   : > { %v826_v6 = vmax.f32 %v824_v4, %v825_v5 }
 0x2e0   : > { %2433 = vrcp.f32 %v826_v6  ;;  %v838_v10 = vand.u32 2147483648, %v826_v6  ;;  %v836_v13 = vand.u32 2147483647, %v826_v6  ;;  %vm832_vm8 = vweird.f32 %v826_v6 }
 0x2e1   : > { %2435 = vrcp.f32 %v2553_v37 }
 0x2e2   : > { %v839_v16 = vor.u32 1.1754944e-38, %v838_v10  ;;  %vm837_vm10 = vcmp.eq.f32.partialorder %v836_v13, 8.507059e+37  ;;  %2437 = vrcp.f32 %v2561_v2 }
 0x2e6   : > { %v2434_v7 = vpop.eup %2433 }
 0x2e7   : > { %v828_v8 = vmul.f32 %v2434_v7, %v826_v6  ;;  %vm833_vm7 = vweird.f32 %v2434_v7  ;;  %v2436_v38 = vpop.eup %2435 }
 0x2e8   : > { %vm834_vm9 = vmor %vm832_vm8, %vm833_vm7  ;;  %v881_v39 = vmul.f32 128.0, %v2436_v38  ;;  %vm885_vm13 = vweird.f32 %v2436_v38  ;;  %v2438_v3 = vpop.eup %2437 }
 0x2e9   : > { %v829_v9 = vsub.f32 1.0, %v828_v8  ;;  %v939_v4 = vmul.f32 2.828427, %v2438_v3  ;;  %vm943_vm15 = vweird.f32 %v2438_v3  ;;  %v896_v8 = vld [vmem:[%s3087_s6] sm:$0xff] }
 0x2ea   : > { %v882_v40 = vsub.f32 1.0, %v881_v39  ;;  %vm947_vm0 = vcmp.gt.f32.partialorder %v896_v8, 0.5 }
 0x2eb   : > { %v830_v11 = vmul.f32 %v2434_v7, %v829_v9  ;;  %v940_v5 = vsub.f32 1.0, %v939_v4 }
 0x2ec   : > { %v883_v41 = vmul.f32 %v2436_v38, %v882_v40 }
 0x2ed   : > { %v831_v14 = vadd.f32 %v2434_v7, %v830_v11  ;;  %v898_v11 = vld [vmem:[%s3088_s8] sm:$0xff] }
 0x2ee   : > { %v884_v42 = vadd.f32 %v2436_v38, %v883_v41 }
 0x2ef   : > { %v835_v17 = vsel %vm834_vm9, %v2434_v7, %v831_v14 }
 0x2f0   : > { %v840_v15 = vsel %vm837_vm10, %v839_v16, %v835_v17  ;;  %v2769_v43 = vsel %vm885_vm13, %v2436_v38, %v884_v42  ;;  %v897_v17 = vld [vmem:[%s3087_s6 + $0x8] sm:$0xff] }
 0x2f1   : > { %v841_v18 = vmul.f32 128.0, %v840_v15  ;;  %v887_v44 = vmul.f32 %v2769_v43, %v826_v6  ;;  %v941_v6 = vmul.f32 %v2438_v3, %v940_v5  ;;  %vm948_vm3 = vcmp.gt.f32.partialorder %v897_v17, 0.5 }
 0x2f3   : > { %v842_v19 = vmul.f32 %v841_v18, %v810_v50  ;;  %v843_v21 = vmul.f32 %v841_v18, %v811_v57  ;;  %v942_v7 = vadd.f32 %v2438_v3, %v941_v6 }
 0x2f5   : > { %v2291_v22 = vcvt.f32.s32 %v842_v19  ;;  %v2299_v23 = vcvt.f32.s32 %v843_v21  ;;  %v2289_v25 = vand.u32 2147483647, %v842_v19  ;;  %v2294_v28 = vand.u32 2147483648, %v842_v19 }
 0x2f6   : > { %v2297_v30 = vand.u32 2147483647, %v843_v21  ;;  %v2302_v20 = vand.u32 2147483648, %v843_v21  ;;  %v944_v9 = vsel %vm943_vm15, %v2438_v3, %v942_v7 }
 0x2f7   : > { %v2292_v24 = vcvt.s32.f32 %v2291_v22  ;;  %v2300_v26 = vcvt.s32.f32 %v2299_v23  ;;  %vm2290_vm11 = vcmp.lt.f32.partialorder %v2289_v25, 8388608.0 }
 0x2f8   : > { %vm2298_vm12 = vcmp.lt.f32.partialorder %v2297_v30, 8388608.0 }
 0x2f9   : > { %v2293_v27 = vand.u32 2147483647, %v2292_v24  ;;  %v2301_v31 = vand.u32 2147483647, %v2300_v26 }
 0x2fb   : > { %v2295_v32 = vor.u32 %v2294_v28, %v2293_v27  ;;  %v2303_v33 = vor.u32 %v2302_v20, %v2301_v31 }
 0x2fd   : > { %v2296_v34 = vsel %vm2290_vm11, %v2295_v32, %v842_v19  ;;  %v2304_v35 = vsel %vm2298_vm12, %v2303_v33, %v843_v21  ;;  %v899_v21 = vld [vmem:[%s3088_s8 + $0x8] sm:$0xff] }
 0x2fe   : > { %v846_v36 = vpack.c.bf16 %v2304_v35, %v2296_v34 }
 0x300   : > { %2211 = vmatmul.msk.bf16.vlgmr.msra.gmra.mxu0 %vm667_vm1, %v846_v36 }
 0x37d   : > { %v875_v46 = vpop.f32.mrf.mxu0 }
 0x37e   : > { %v888_v47 = vmul.f32 %v887_v44, %v875_v46 }
 0x380   : > { %v2777_v48 = vmul.f32 %v2411_v45, %v888_v47 }
 0x382   : > { %902 = vrot.lane.b32.xlu2 %v2777_v48, %s2554_s16 }
 0x385   : > { %v877_v49 = vpop.f32.mrf.mxu0 }
 0x386   : > { %v889_v50 = vmul.f32 %v887_v44, %v877_v49 }
 0x388   : > { %v2780_v51 = vmul.f32 %v2411_v45, %v889_v50 }
 0x38a   : > { %1041 = vrot.lane.b32.xlu2 %v2777_v48, %s2555_s21  ;;  %1043 = vrot.lane.b32.xlu0 %v2780_v51, %s2555_s21  ;;  %v2846_v49 = vpack.i.bf16 %v2777_v48, %v2780_v51 }
 0x38b   : > { %904 = vrot.lane.b32.xlu1 %v2780_v51, %s2554_s16  ;;  %s3089_s16 = sld [smem:[#allocation7_spill]] }
 0x392   : > { %1317 = vrot.lane.b32.xlu2 %v2780_v51, %s2556_s3  ;;  %1039 = vrot.lane.b32.xlu0 %v2780_v51, %s2557_s29 }
 0x393   : > { %1037 = vrot.lane.b32.xlu1 %v2777_v48, %s2557_s29 }
 0x39a   : > { %1180 = vrot.lane.b32.xlu2 %v2780_v51, %s2558_s18  ;;  %1311 = vrot.lane.b32.xlu0 %v2777_v48, %s2559_s24 }
 0x39b   : > { %1315 = vrot.lane.b32.xlu1 %v2777_v48, %s2556_s3 }
 0x3a2   : > { %1174 = vrot.lane.b32.xlu2 %v2777_v48, %s2560_s25  ;;  %1313 = vrot.lane.b32.xlu0 %v2780_v51, %s2559_s24  ;;  %s2563_s24 = smov 64  }
 0x3a3   : > { %1178 = vrot.lane.b32.xlu1 %v2777_v48, %s2558_s18  ;;  %s2562_s18 = smov 56  }
 0x3ab   : > { %1176 = vrot.lane.b32.xlu1 %v2780_v51, %s2560_s25  ;;  %s2564_s25 = smov 48  }
 0x3dc   : > { %v903_v52 = vpop.permute.xlu2 %902 }
 0x3e4   : > { %v1042_v53 = vpop.permute.xlu2 %1041 }
 0x3ec   : > { %v1318_v54 = vpop.permute.xlu2 %1317 }
 0x3f4   : > { %v1181_v55 = vpop.permute.xlu2 %1180 }
 0x3f5   : > { %2224 = vmatpush.xpose.msk.msrb.mxu0 %vm906_vm14, %v1181_v55 }
 0x3fc   : > { %v1044_v56 = vpop.permute.xlu0 %1043  ;;  %v1175_v63 = vpop.permute.xlu2 %1174 }
 0x3fd   : > { %v905_v57 = vpop.permute.xlu1 %904  ;;  %2218 = vmatpush.xpose.msk.msra.mxu3 %vm906_vm14, %v1044_v56 }
 0x3fe   : > { %2212 = vmatpush.xpose.msk.msra.mxu1 %vm906_vm14, %v905_v57 }
 0x401   : > { %2219 = vmatpush.xpose.msk.msra.mxu3 %vm906_vm14, %v1042_v53 }
 0x402   : > { %2213 = vmatpush.xpose.msk.msra.mxu1 %vm906_vm14, %v903_v52 }
 0x404   : > { %v1040_v59 = vpop.permute.xlu0 %1039 }
 0x405   : > { %2230 = vmatpush.xpose.msk.msrb.mxu3 %vm906_vm14, %v1318_v54  ;;  %2214 = vmatmul.msk.f32.vlgmr.msra.gmra.mxu1 %vm906_vm14, %v2777_v48  ;;  %v1038_v58 = vpop.permute.xlu1 %1037 }
 0x406   : > { %2220 = vmatmul.msk.f32.vlgmr.msra.gmra.mxu3 %vm906_vm14, %v1038_v58 }
 0x40c   : > { %v1312_v61 = vpop.permute.xlu0 %1311 }
 0x40d   : > { %2215 = vmatmul.msk.f32.gmra.mxu1 %vm906_vm14, %v2780_v51  ;;  %v1316_v60 = vpop.permute.xlu1 %1315 }
 0x40e   : > { %2221 = vmatmul.msk.f32.gmra.mxu3 %vm906_vm14, %v1040_v59 }
 0x40f   : > { %2231 = vmatpush.xpose.msk.msrb.mxu3 %vm906_vm14, %v1316_v60 }
 0x414   : > { %v1314_v0 = vpop.permute.xlu0 %1313 }
 0x415   : > { %v1179_v62 = vpop.permute.xlu1 %1178 }
 0x416   : > { %2225 = vmatpush.xpose.msk.msrb.mxu0 %vm906_vm14, %v1179_v62  ;;  %2232 = vmatmul.msk.f32.vlgmr.msrb.gmra.mxu3 %vm906_vm14, %v1312_v61 }
 0x419   : > { %2226 = vmatmul.msk.f32.vlgmr.msrb.gmra.mxu0 %vm906_vm14, %v1175_v63 }
 0x41d   : > { %v1177_v1 = vpop.permute.xlu1 %1176 }
 0x41e   : > { %2233 = vmatmul.msk.f32.gmra.mxu3 %vm906_vm14, %v1314_v0 }
 0x421   : > { %2227 = vmatmul.msk.f32.gmra.mxu0 %vm906_vm14, %v1177_v1 }
 0x482   : > { %v932_v10 = vpop.f32.mrf.mxu1 }
 0x483   : > { %v945_v13 = vmul.f32 %v944_v9, %v932_v10 }
 0x485   : > { %v949_v14 = vsel %vm947_vm0, %v945_v13, %v898_v11 }
 0x486   : > { %v952_v16 = vsel %vm951_vm2, %v949_v14, -inf }
 0x487   : > { %953 = vmax.xlane.f32.xlu0 %v952_v16 }
 0x489   : > { %v1070_v15 = vpop.f32.mrf.mxu3 }
 0x48a   : > { %v1076_v18 = vmul.f32 %v1070_v15, %v944_v9  ;;  %v935_v19 = vpop.f32.mrf.mxu1 }
 0x48b   : > { %v946_v22 = vmul.f32 %v944_v9, %v935_v19 }
 0x48c   : > { %v1078_v23 = vsel %vm947_vm0, %v1076_v18, %v898_v11 }
 0x48d   : > { %v1080_v24 = vsel %vm951_vm2, %v1078_v23, -inf  ;;  %v950_v25 = vsel %vm948_vm3, %v946_v22, %v899_v21 }
 0x48e   : > { %1081 = vmax.xlane.f32.xlu1 %v1080_v24  ;;  %v955_v26 = vsel %vm951_vm2, %v950_v25, -inf }
 0x48f   : > { %956 = vmax.xlane.f32.xlu2 %v955_v26 }
 0x491   : > { %v1073_v27 = vpop.f32.mrf.mxu3 }
 0x492   : > { %v1077_v28 = vmul.f32 %v1073_v27, %v944_v9 }
 0x494   : > { %v1079_v30 = vsel %vm948_vm3, %v1077_v28, %v899_v21 }
 0x495   : > { %v1083_v31 = vsel %vm951_vm2, %v1079_v30, -inf }
 0x496   : > { %1084 = vmax.xlane.f32.xlu0 %v1083_v31  ;;  %v1207_v20 = vpop.f32.mrf.mxu0 }
 0x497   : > { %v1213_v32 = vmul.f32 %v1207_v20, %v944_v9 }
 0x499   : > { %v1344_v33 = vpop.f32.mrf.mxu3  ;;  %v1215_v34 = vsel %vm947_vm0, %v1213_v32, %v898_v11 }
 0x49a   : > { %v1217_v35 = vsel %vm951_vm2, %v1215_v34, -inf  ;;  %v1350_v42 = vmul.f32 %v1344_v33, %v944_v9 }
 0x49b   : > { %1218 = vmax.xlane.f32.xlu1 %v1217_v35 }
 0x49c   : > { %v1352_v46 = vsel %vm947_vm0, %v1350_v42, %v898_v11 }
 0x49d   : > { %v1354_v47 = vsel %vm951_vm2, %v1352_v46, -inf }
 0x49e   : > { %v1210_v36 = vpop.f32.mrf.mxu0 }
 0x49f   : > { %v1214_v37 = vmul.f32 %v1210_v36, %v944_v9 }
 0x4a1   : > { %v1347_v38 = vpop.f32.mrf.mxu3  ;;  %v2836_v39 = vsel %vm948_vm3, %v1214_v37, %v899_v21 }
 0x4a2   : > { %v1351_v40 = vmul.f32 %v1347_v38, %v944_v9  ;;  %v1220_v41 = vsel %vm951_vm2, %v2836_v39, -inf }
 0x4a3   : > { %1221 = vmax.xlane.f32.xlu2 %v1220_v41 }
 0x4a4   : > { %v1353_v44 = vsel %vm948_vm3, %v1351_v40, %v899_v21 }
 0x4a5   : > { %v1357_v45 = vsel %vm951_vm2, %v1353_v44, -inf }
 0x4a6   : > { %1358 = vmax.xlane.f32.xlu0 %v1357_v45 }
 0x4ab   : > { %1355 = vmax.xlane.f32.xlu2 %v1354_v47 }
 0x4ba   : > { %2395 = vrot.lane.b32.xlu0 %v2846_v49, %s2562_s18  ;;  %s2571_s18 = smov [#allocation3]  }
 0x4fa   : > { %v954_v50 = vpop.xlane.xlu0 %953 }
 0x4fb   : > { %v958_v52 = vsub.f32 %v949_v14, %v954_v50 }
 0x4fd   : > { %v960_v53 = vmul.f32 1.442695, %v958_v52 }
 0x4ff   : > { %2439 = vpow2.f32 %v960_v53 }
 0x501   : > { %v1082_v58 = vpop.xlane.xlu1 %1081 }
 0x502   : > { %v957_v54 = vpop.xlane.xlu2 %956  ;;  %v1086_v1 = vsub.f32 %v1078_v23, %v1082_v58 }
 0x503   : > { %v959_v55 = vsub.f32 %v950_v25, %v957_v54 }
 0x504   : > { %v1088_v4 = vmul.f32 1.442695, %v1086_v1 }
 0x505   : > { %v2849_v56 = vpop.eup %2439  ;;  %v962_v57 = vmul.f32 1.442695, %v959_v55 }
 0x506   : > { %v964_v59 = vsel %vm951_vm2, %v2849_v56, 0.0 }
 0x507   : > { %2441 = vpow2.f32 %v962_v57  ;;  %965 = vadd.xlane.f32.xlu1 %v964_v59 }
 0x509   : > { %v1085_v48 = vpop.xlane.xlu0 %1084 }
 0x50a   : > { %v1087_v51 = vsub.f32 %v1079_v30, %v1085_v48 }
 0x50c   : > { %v1090_v60 = vmul.f32 1.442695, %v1087_v51 }
 0x50d   : > { %v2853_v61 = vpop.eup %2441 }
 0x50e   : > { %2443 = vpow2.f32 %v1090_v60  ;;  %v1219_v62 = vpop.xlane.xlu1 %1218  ;;  %v967_v63 = vsel %vm951_vm2, %v2853_v61, 0.0 }
 0x50f   : > { %v1223_v0 = vsub.f32 %v1215_v34, %v1219_v62  ;;  %968 = vadd.xlane.f32.xlu0 %v967_v63 }
 0x511   : > { %v1225_v2 = vmul.f32 1.442695, %v1223_v0 }
 0x513   : > { %2445 = vpow2.f32 %v1225_v2 }
 0x514   : > { %v2857_v3 = vpop.eup %2443  ;;  %2447 = vpow2.f32 %v1088_v4 }
 0x515   : > { %v1095_v5 = vsel %vm951_vm2, %v2857_v3, 0.0 }
 0x516   : > { %v1222_v6 = vpop.xlane.xlu2 %1221 }
 0x517   : > { %1096 = vadd.xlane.f32.xlu0 %v1095_v5  ;;  %v1224_v23 = vsub.f32 %v2836_v39, %v1222_v6 }
 0x519   : > { %v2861_v7 = vpop.eup %2445  ;;  %v1359_v9 = vpop.xlane.xlu0 %1358  ;;  %v1227_v24 = vmul.f32 1.442695, %v1224_v23 }
 0x51a   : > { %v1229_v8 = vsel %vm951_vm2, %v2861_v7, 0.0  ;;  %v2865_v11 = vpop.eup %2447  ;;  %v1361_v14 = vsub.f32 %v1353_v44, %v1359_v9 }
 0x51b   : > { %1230 = vadd.xlane.f32.xlu2 %v1229_v8  ;;  %v1092_v17 = vsel %vm951_vm2, %v2865_v11, 0.0 }
 0x51c   : > { %v1364_v15 = vmul.f32 1.442695, %v1361_v14 }
 0x51e   : > { %v1356_v10 = vpop.xlane.xlu2 %1355 }
 0x51f   : > { %v1360_v13 = vsub.f32 %v1352_v46, %v1356_v10 }
 0x520   : > { %2390 = vrot.lane.b32.xlu1 %v2846_v49, %s2563_s24  ;;  %s2037_s24 = sshll.u32 %s2571_s18, 4  ;;  %s2038_s24 = int_to_ptr.vmem [resolvable:$true] %s2037_s24 }
 0x521   : > { %v1362_v16 = vmul.f32 1.442695, %v1360_v13 }
 0x523   : > { %2449 = vpow2.f32 %v1362_v16  ;;  %1093 = vadd.xlane.f32.xlu2 %v1092_v17 }
 0x524   : > { %2451 = vpow2.f32 %v1364_v15 }
 0x525   : > { %2453 = vpow2.f32 %v1227_v24 }
 0x529   : > { %v2870_v18 = vpop.eup %2449 }
 0x52a   : > { %v1366_v19 = vsel %vm951_vm2, %v2870_v18, 0.0  ;;  %v2875_v21 = vpop.eup %2451 }
 0x52b   : > { %2405 = vrot.lane.b32.xlu0 %v2846_v49, %s2564_s25  ;;  %1367 = vadd.xlane.f32.xlu2 %v1366_v19  ;;  %v1369_v22 = vsel %vm951_vm2, %v2875_v21, 0.0  ;;  %v2880_v25 = vpop.eup %2453 }
 0x52c   : > { %v1232_v26 = vsel %vm951_vm2, %v2880_v25, 0.0  ;;  %v2396_v27 = vpop.permute.xlu0 %2395 }
 0x52d   : > { %v2397_v51 = vunpack.i.l.bf16 %v2396_v27  ;;  %v2398_v1 = vunpack.i.h.bf16 %v2396_v27 }
 0x533   : > { %1370 = vadd.xlane.f32.xlu2 %v1369_v22 }
 0x54a   : > { %1233 = vadd.xlane.f32.xlu1 %v1232_v26 }
 0x54b   : > { %2400 = vrot.lane.b32.xlu2 %v2846_v49, %s2565_s2  ;;  %s3090_s2 = sld [smem:[#allocation16_spill]] }
 0x57a   : > { %v966_v28 = vpop.xlane.xlu1 %965 }
 0x57b   : > { %2455 = vrcp.f32 %v966_v28  ;;  %v981_v38 = vand.u32 2147483648, %v966_v28  ;;  %vm975_vm5 = vweird.f32 %v966_v28  ;;  %v979_v41 = vand.u32 2147483647, %v966_v28 }
 0x57d   : > { %v982_v45 = vor.u32 1.1754944e-38, %v981_v38  ;;  %vm980_vm7 = vcmp.eq.f32.partialorder %v979_v41, 8.507059e+37 }
 0x581   : > { %v2456_v30 = vpop.eup %2455 }
 0x582   : > { %v971_v31 = vmul.f32 %v2456_v30, %v966_v28  ;;  %v969_v20 = vpop.xlane.xlu0 %968  ;;  %vm976_vm4 = vweird.f32 %v2456_v30 }
 0x583   : > { %2457 = vrcp.f32 %v969_v20  ;;  %vm977_vm6 = vmor %vm975_vm5, %vm976_vm4  ;;  %v996_v53 = vand.u32 2147483648, %v969_v20  ;;  %vm990_vm9 = vweird.f32 %v969_v20  ;;  %v994_v48 = vand.u32 2147483647, %v969_v20 }
 0x584   : > { %v972_v32 = vsub.f32 1.0, %v971_v31 }
 0x585   : > { %v997_v63 = vor.u32 1.1754944e-38, %v996_v53  ;;  %vm995_vm11 = vcmp.eq.f32.partialorder %v994_v48, 8.507059e+37 }
 0x586   : > { %v973_v33 = vmul.f32 %v2456_v30, %v972_v32 }
 0x588   : > { %v974_v37 = vadd.f32 %v2456_v30, %v973_v33 }
 0x589   : > { %v2458_v34 = vpop.eup %2457 }
 0x58a   : > { %v986_v35 = vmul.f32 %v2458_v34, %v969_v20  ;;  %v2885_v39 = vpop.xlane.xlu0 %1096  ;;  %v978_v44 = vsel %vm977_vm6, %v2456_v30, %v974_v37  ;;  %vm991_vm8 = vweird.f32 %v2458_v34 }
 0x58b   : > { %v983_v49 = vsel %vm980_vm7, %v982_v45, %v978_v44  ;;  %vm992_vm10 = vmor %vm990_vm9, %vm991_vm8  ;;  %v1124_v37 = vand.u32 2147483648, %v2885_v39  ;;  %vm1118_vm8 = vweird.f32 %v2885_v39  ;;  %v1122_v41 = vand.u32 2147483647, %v2885_v39 }
 0x58c   : > { %v987_v36 = vsub.f32 1.0, %v986_v35  ;;  %v984_v59 = vmul.f32 %v2849_v56, %v983_v49 }
 0x58d   : > { %v1125_v45 = vor.u32 1.1754944e-38, %v1124_v37 }
 0x58e   : > { %v1231_v40 = vpop.xlane.xlu2 %1230  ;;  %v988_v42 = vmul.f32 %v2458_v34, %v987_v36 }
 0x58f   : > { %2459 = vrcp.f32 %v1231_v40  ;;  %v1246_v4 = vand.u32 2147483648, %v1231_v40  ;;  %v1244_v6 = vand.u32 2147483647, %v1231_v40  ;;  %vm1240_vm13 = vweird.f32 %v1231_v40 }
 0x590   : > { %2461 = vrcp.f32 %v2885_v39  ;;  %v989_v50 = vadd.f32 %v2458_v34, %v988_v42 }
 0x591   : > { %v1247_v15 = vor.u32 1.1754944e-38, %v1246_v4  ;;  %vm1245_vm0 = vcmp.eq.f32.partialorder %v1244_v6, 8.507059e+37 }
 0x592   : > { %v2391_v46 = vpop.permute.xlu1 %2390  ;;  %v993_v62 = vsel %vm992_vm10, %v2458_v34, %v989_v50  ;;  %vm1123_vm10 = vcmp.eq.f32.partialorder %v1122_v41, 8.507059e+37 }
 0x593   : > { %v2392_v47 = vunpack.i.l.bf16 %v2391_v46  ;;  %v2393_v54 = vunpack.i.h.bf16 %v2391_v46  ;;  %v998_v56 = vsel %vm995_vm11, %v997_v63, %v993_v62 }
 0x594   : > { %v999_v16 = vmul.f32 %v2853_v61, %v998_v56 }
 0x595   : > { %v2460_v52 = vpop.eup %2459  ;;  %1026 = vmatpush.msra.mxu2 %v2392_v47 }
 0x596   : > { %v2888_v55 = vpop.eup %2461  ;;  %v1236_v57 = vmul.f32 %v2460_v52, %v1231_v40  ;;  %v1094_v58 = vpop.xlane.xlu2 %1093  ;;  %vm1241_vm12 = vweird.f32 %v2460_v52 }
 0x597   : > { %2463 = vrcp.f32 %v1094_v58  ;;  %1027 = vmatpush.msra.mxu2 %v2393_v54  ;;  %v1114_v0 = vmul.f32 %v2888_v55, %v2885_v39  ;;  %vm1242_vm15 = vmor %vm1240_vm13, %vm1241_vm12  ;;  %v1109_v26 = vand.u32 2147483648, %v1094_v58  ;;  %v1107_v30 = vand.u32 2147483647, %v1094_v58 }
 0x598   : > { %v1237_v60 = vsub.f32 1.0, %v1236_v57  ;;  %2216 = vmatmul.msk.f32.vlgmr.msra.gmra.mxu2 %vm951_vm2, %v984_v59  ;;  %vm1103_vm4 = vweird.f32 %v1094_v58  ;;  %vm1119_vm6 = vweird.f32 %v2888_v55 }
 0x599   : > { %1154 = vmatpush.msrb.mxu2 %v2397_v51  ;;  %v1115_v9 = vsub.f32 1.0, %v1114_v0  ;;  %v1110_v32 = vor.u32 1.1754944e-38, %v1109_v26  ;;  %vm1108_vm7 = vcmp.eq.f32.partialorder %v1107_v30, 8.507059e+37  ;;  %vm1120_vm9 = vmor %vm1118_vm8, %vm1119_vm6 }
 0x59a   : > { %v1238_v2 = vmul.f32 %v2460_v52, %v1237_v60 }
 0x59b   : > { %1155 = vmatpush.msrb.mxu2 %v2398_v1  ;;  %v1116_v24 = vmul.f32 %v2888_v55, %v1115_v9 }
 0x59c   : > { %v1239_v5 = vadd.f32 %v2460_v52, %v1238_v2 }
 0x59d   : > { %v2464_v8 = vpop.eup %2463  ;;  %v2406_v10 = vpop.permute.xlu0 %2405  ;;  %v1117_v36 = vadd.f32 %v2888_v55, %v1116_v24 }
 0x59e   : > { %v1099_v13 = vmul.f32 %v2464_v8, %v1094_v58  ;;  %v2894_v14 = vpop.xlane.xlu2 %1367  ;;  %v2407_v17 = vunpack.i.l.bf16 %v2406_v10  ;;  %v2408_v22 = vunpack.i.h.bf16 %v2406_v10  ;;  %v1243_v23 = vsel %vm1242_vm15, %v2460_v52, %v1239_v5 }
 0x59f   : > { %2465 = vrcp.f32 %v2894_v14  ;;  %v1248_v27 = vsel %vm1245_vm0, %v1247_v15, %v1243_v23  ;;  %vm1104_vm3 = vweird.f32 %v2464_v8  ;;  %v1121_v44 = vsel %vm1120_vm9, %v2888_v55, %v1117_v36 }
 0x5a0   : > { %v1100_v19 = vsub.f32 1.0, %v1099_v13  ;;  %2217 = vmatmul.msk.f32.gmra.mxu2 %vm951_vm2, %v999_v16  ;;  %1291 = vmatpush.msrb.mxu1 %v2407_v17  ;;  %v1249_v61 = vmul.f32 %v2861_v7, %v1248_v27  ;;  %vm1105_vm5 = vmor %vm1103_vm4, %vm1104_vm3  ;;  %v1126_v47 = vsel %vm1123_vm10, %v1125_v45, %v1121_v44  ;;  %v1383_v53 = vand.u32 2147483648, %v2894_v14 }
 0x5a1   : > { %vm1377_vm12 = vweird.f32 %v2894_v14  ;;  %v1127_v57 = vmul.f32 %v2857_v3, %v1126_v47  ;;  %vm1308_vm10 = vcmask 195712  }
 0x5a2   : > { %v1101_v28 = vmul.f32 %v2464_v8, %v1100_v19  ;;  %1292 = vmatpush.msrb.mxu1 %v2408_v22  ;;  %v1384_v48 = vor.u32 1.1754944e-38, %v1383_v53 }
 0x5a3   : > { %2228 = vmatmul.msk.f32.vlgmr.msrb.gmra.mxu1 %vm951_vm2, %v1249_v61 }
 0x5a4   : > { %v1102_v31 = vadd.f32 %v2464_v8, %v1101_v28 }
 0x5a5   : > { %v2466_v20 = vpop.eup %2465 }
 0x5a6   : > { %v1373_v33 = vmul.f32 %v2466_v20, %v2894_v14  ;;  %v1371_v34 = vpop.xlane.xlu2 %1370  ;;  %v1106_v35 = vsel %vm1105_vm5, %v2464_v8, %v1102_v31  ;;  %vm1378_vm11 = vweird.f32 %v2466_v20 }
 0x5a7   : > { %2467 = vrcp.f32 %v1371_v34  ;;  %v1111_v7 = vsel %vm1108_vm7, %v1110_v32, %v1106_v35  ;;  %vm1379_vm13 = vmor %vm1377_vm12, %vm1378_vm11  ;;  %v1398_v62 = vand.u32 2147483648, %v1371_v34  ;;  %vm1392_vm3 = vweird.f32 %v1371_v34 }
 0x5a8   : > { %v1374_v38 = vsub.f32 1.0, %v1373_v33  ;;  %v1112_v40 = vmul.f32 %v2865_v11, %v1111_v7  ;;  %v1381_v11 = vand.u32 2147483647, %v2894_v14  ;;  %v1396_v0 = vand.u32 2147483647, %v1371_v34 }
 0x5a9   : > { %v1399_v1 = vor.u32 1.1754944e-38, %v1398_v62  ;;  %vm1445_vm11 = vcmask 261312  }
 0x5aa   : > { %v1375_v42 = vmul.f32 %v2466_v20, %v1374_v38  ;;  %2222 = vmatmul.msk.f32.vlgmr.msrb.gmra.mxu2 %vm951_vm2, %v1112_v40  ;;  %vm1382_vm15 = vcmp.eq.f32.partialorder %v1381_v11, 8.507059e+37  ;;  %vm1397_vm5 = vcmp.eq.f32.partialorder %v1396_v0, 8.507059e+37 }
 0x5ac   : > { %v1376_v49 = vadd.f32 %v2466_v20, %v1375_v42 }
 0x5ad   : > { %v2468_v46 = vpop.eup %2467 }
 0x5ae   : > { %v1388_v50 = vmul.f32 %v2468_v46, %v1371_v34  ;;  %v2401_v52 = vpop.permute.xlu2 %2400  ;;  %v1380_v58 = vsel %vm1379_vm13, %v2466_v20, %v1376_v49  ;;  %vm1393_vm0 = vweird.f32 %v2468_v46 }
 0x5af   : > { %v2402_v54 = vunpack.i.l.bf16 %v2401_v52  ;;  %v2403_v55 = vunpack.i.h.bf16 %v2401_v52  ;;  %v1385_v51 = vsel %vm1382_vm15, %v1384_v48, %v1380_v58  ;;  %vm1394_vm4 = vmor %vm1392_vm3, %vm1393_vm0 }
 0x5b0   : > { %v1389_v39 = vsub.f32 1.0, %v1388_v50  ;;  %v1386_v63 = vmul.f32 %v2870_v18, %v1385_v51 }
 0x5b1   : > { %1428 = vmatpush.msra.mxu2 %v2402_v54 }
 0x5b2   : > { %v1390_v59 = vmul.f32 %v2468_v46, %v1389_v39  ;;  %2223 = vmatmul.msk.f32.gmra.mxu2 %vm951_vm2, %v1127_v57 }
 0x5b3   : > { %1429 = vmatpush.msra.mxu2 %v2403_v55 }
 0x5b4   : > { %v1391_v60 = vadd.f32 %v2468_v46, %v1390_v59 }
 0x5b6   : > { %v1395_v3 = vsel %vm1394_vm4, %v2468_v46, %v1391_v60 }
 0x5b7   : > { %v1400_v4 = vsel %vm1397_vm5, %v1399_v1, %v1395_v3 }
 0x5b8   : > { %v1401_v56 = vmul.f32 %v2875_v21, %v1400_v4 }
 0x5ba   : > { %2234 = vmatmul.msk.f32.vlgmr.msra.gmra.mxu2 %vm951_vm2, %v1386_v63 }
 0x5bd   : > { %v1234_v2 = vpop.xlane.xlu1 %1233 }
 0x5be   : > { %2469 = vrcp.f32 %v1234_v2  ;;  %v1261_v9 = vand.u32 2147483648, %v1234_v2  ;;  %v1259_v18 = vand.u32 2147483647, %v1234_v2  ;;  %vm1255_vm7 = vweird.f32 %v1234_v2 }
 0x5c0   : > { %v1262_v14 = vor.u32 1.1754944e-38, %v1261_v9  ;;  %vm1260_vm9 = vcmp.eq.f32.partialorder %v1259_v18, 8.507059e+37  ;;  %v2282_v18 = vld [vmem:[%s3089_s16 + $0x8] sm:$0xff] }
 0x5c1   : > { %1554 = vmatpush.bf16.msra.mxu0 %v2282_v18 }
 0x5c2   : > { %2235 = vmatmul.msk.f32.gmra.mxu2 %vm951_vm2, %v1401_v56 }
 0x5c4   : > { %v2470_v5 = vpop.eup %2469 }
 0x5c5   : > { %v1251_v6 = vmul.f32 %v2470_v5, %v1234_v2  ;;  %vm1256_vm6 = vweird.f32 %v2470_v5 }
 0x5c6   : > { %vm1257_vm8 = vmor %vm1255_vm7, %vm1256_vm6 }
 0x5c7   : > { %v1252_v8 = vsub.f32 1.0, %v1251_v6 }
 0x5c9   : > { %v1253_v10 = vmul.f32 %v2470_v5, %v1252_v8 }
 0x5cb   : > { %v1254_v13 = vadd.f32 %v2470_v5, %v1253_v10 }
 0x5cd   : > { %v1258_v16 = vsel %vm1257_vm8, %v2470_v5, %v1254_v13  ;;  %v2281_v13 = vld [vmem:[%s3089_s16] sm:$0xff] }
 0x5ce   : > { %v1263_v17 = vsel %vm1260_vm9, %v1262_v14, %v1258_v16  ;;  %1555 = vmatpush.bf16.msra.mxu0 %v2281_v13 }
 0x5cf   : > { %v1264_v15 = vmul.f32 %v2880_v25, %v1263_v17 }
 0x5d1   : > { %2229 = vmatmul.msk.f32.gmra.mxu1 %vm951_vm2, %v1264_v15  ;;  %vm1171_vm2 = vcmask 130112  }
 0x61b   : > { %v1029_v21 = vpop.f32.mrf.mxu2 }
 0x61c   : > { %1035 = vst.msk [vmem:[#allocation2] sm:$0xff] %vm906_vm14, %v1029_v21 }
 0x620   : > { %v1294_v19 = vpop.f32.mrf.mxu1 }
 0x621   : > { %1302 = vrot.lane.b32.xlu2 %v1294_v19, %s2566_s5 }
 0x623   : > { %v1032_v22 = vpop.f32.mrf.mxu2 }
 0x624   : > { %1036 = vst.msk [vmem:[#allocation2 + $0x8] sm:$0xff] %vm906_vm14, %v1032_v22 }
 0x62d   : > { %v1157_v23 = vpop.f32.mrf.mxu2 }
 0x635   : > { %v1160_v24 = vpop.f32.mrf.mxu2 }
 0x63d   : > { %v1431_v26 = vpop.f32.mrf.mxu2 }
 0x63e   : > { %1439 = vrot.lane.b32.xlu2 %v1431_v26, %s2567_s30 }
 0x645   : > { %v1434_v25 = vpop.f32.mrf.mxu2 }
 0x64e   : > { %v1297_v27 = vpop.f32.mrf.mxu1 }
 0x64f   : > { %1304 = vrot.lane.b32.xlu0 %v1297_v27, %s2566_s5  ;;  %s2039_s5 = sshll.u32 %s3090_s2, 4  ;;  %s2040_s5 = int_to_ptr.hbm [resolvable:$true] %s2039_s5 }
 0x657   : > { %1165 = vrot.lane.b32.xlu0 %v1157_v23, %s2568_s7 }
 0x65f   : > { %1167 = vrot.lane.b32.xlu0 %v1160_v24, %s2568_s7 }
 0x667   : > { %1441 = vrot.lane.b32.xlu0 %v1434_v25, %s2567_s30 }
 0x67b   : > { %v1303_v30 = vpop.permute.xlu2 %1302 }
 0x698   : > { %v1440_v31 = vpop.permute.xlu2 %1439 }
 0x6c1   : > { %v1305_v28 = vpop.permute.xlu0 %1304 }
 0x6c9   : > { %v1166_v61 = vpop.permute.xlu0 %1165 }
 0x6ca   : > { %1172 = vst.msk [vmem:[#allocation2] sm:$0xff] %vm1171_vm2, %v1166_v61 }
 0x6cb   : > { %1309 = vst.msk [vmem:[#allocation2] sm:$0xff] %vm1308_vm10, %v1303_v30 }
 0x6cc   : > { %1446 = vst.msk [vmem:[#allocation2] sm:$0xff] %vm1445_vm11, %v1440_v31 }
 0x6d1   : > { %v1168_v20 = vpop.permute.xlu0 %1167 }
 0x6d2   : > { %1173 = vst.msk [vmem:[#allocation2 + $0x8] sm:$0xff] %vm1171_vm2, %v1168_v20 }
 0x6d3   : > { %1310 = vst.msk [vmem:[#allocation2 + $0x8] sm:$0xff] %vm1308_vm10, %v1305_v28  ;;  %v1448_v32 = vld [vmem:[#allocation2] sm:$0xff] }
 0x6d4   : > { %v1450_v33 = vsel %vm667_vm1, %v1448_v32, 0.0 }
 0x6d5   : > { %1451 = vadd.xlane.f32.xlu1 %v1450_v33 }
 0x6d9   : > { %v1442_v34 = vpop.permute.xlu0 %1441 }
 0x6da   : > { %1447 = vst.msk [vmem:[#allocation2 + $0x8] sm:$0xff] %vm1445_vm11, %v1442_v34 }
 0x6e1   : > { %v1449_v35 = vld [vmem:[#allocation2 + $0x8] sm:$0xff] }
 0x6e2   : > { %v1453_v36 = vsel %vm667_vm1, %v1449_v35, 0.0 }
 0x6e3   : > { %1454 = vadd.xlane.f32.xlu2 %v1453_v36 }
 0x748   : > { %v1452_v37 = vpop.xlane.xlu1 %1451 }
 0x749   : > { %v1456_v7 = vmul.f32 %v1452_v37, %v2734_v12 }
 0x74b   : > { %v1458_v38 = vsub.f32 %v1448_v32, %v1456_v7 }
 0x74d   : > { %v1460_v40 = vmul.f32 %v1458_v38, %v1458_v38 }
 0x74f   : > { %v1462_v41 = vsel %vm667_vm1, %v1460_v40, 0.0 }
 0x750   : > { %1463 = vadd.xlane.f32.xlu0 %v1462_v41 }
 0x756   : > { %v1455_v42 = vpop.xlane.xlu2 %1454 }
 0x757   : > { %v1457_v44 = vmul.f32 %v1455_v42, %v2734_v12 }
 0x759   : > { %v1459_v45 = vsub.f32 %v1449_v35, %v1457_v44 }
 0x75b   : > { %v1461_v46 = vmul.f32 %v1459_v45, %v1459_v45 }
 0x75d   : > { %v1465_v47 = vsel %vm667_vm1, %v1461_v46, 0.0 }
 0x75e   : > { %1466 = vadd.xlane.f32.xlu1 %v1465_v47 }
 0x7c3   : > { %v1464_v49 = vpop.xlane.xlu0 %1463 }
 0x7c4   : > { %v1468_v50 = vmul.f32 %v1464_v49, %v2734_v12 }
 0x7c6   : > { %v1470_v52 = vadd.f32 1e-05, %v1468_v50 }
 0x7c8   : > { %2471 = vrsqrt.f32 %v1470_v52  ;;  %vm1478_vm12 = vweird.f32 %v1470_v52 }
 0x7ce   : > { %v2472_v53 = vpop.eup %2471 }
 0x7cf   : > { %v1473_v54 = vmul.f32 %v2472_v53, %v1470_v52  ;;  %vm1479_vm14 = vweird.f32 %v2472_v53 }
 0x7d0   : > { %vm1480_vm13 = vmor %vm1478_vm12, %vm1479_vm14 }
 0x7d1   : > { %v1474_v11 = vmul.f32 %v2472_v53, %v1473_v54  ;;  %v1467_v39 = vpop.xlane.xlu1 %1466 }
 0x7d2   : > { %v1469_v57 = vmul.f32 %v1467_v39, %v2734_v12 }
 0x7d3   : > { %v1475_v55 = vmul.f32 0.5, %v1474_v11  ;;  %v2412_v11 = vld [vmem:[%s640_s17] ss:$0 sm:$0xff] }
 0x7d4   : > { %v1471_v58 = vadd.f32 1e-05, %v1469_v57 }
 0x7d5   : > { %v1476_v59 = vsub.f32 1.5, %v1475_v55 }
 0x7d6   : > { %2473 = vrsqrt.f32 %v1471_v58  ;;  %vm1488_vm0 = vweird.f32 %v1471_v58 }
 0x7d7   : > { %v1477_v48 = vmul.f32 %v2472_v53, %v1476_v59 }
 0x7d9   : > { %v1481_v51 = vsel %vm1480_vm13, %v2472_v53, %v1477_v48 }
 0x7da   : > { %v1492_v60 = vmul.f32 %v1481_v51, %v1458_v38 }
 0x7dc   : > { %v2474_v62 = vpop.eup %2473  ;;  %v1494_v63 = vand.u32 2147483647, %v1492_v60 }
 0x7dd   : > { %v1483_v0 = vmul.f32 %v2474_v62, %v1471_v58  ;;  %vm1489_vm15 = vweird.f32 %v2474_v62  ;;  %v2507_v58 = vld [vmem:[#allocation3] sm:$0xff] }
 0x7de   : > { %v1496_v3 = vsel %vm667_vm1, %v1494_v63, -inf  ;;  %vm1490_vm3 = vmor %vm1488_vm0, %vm1489_vm15  ;;  %v2508_v63 = vld [vmem:[#allocation3 + $0x8] sm:$0xff] }
 0x7df   : > { %v1484_v1 = vmul.f32 %v2474_v62, %v1483_v0  ;;  %1497 = vmax.xlane.f32.xlu1 %v1496_v3 }
 0x7e1   : > { %v1485_v2 = vmul.f32 0.5, %v1484_v1 }
 0x7e3   : > { %v1486_v4 = vsub.f32 1.5, %v1485_v2 }
 0x7e5   : > { %v1487_v56 = vmul.f32 %v2474_v62, %v1486_v4 }
 0x7e7   : > { %v1491_v5 = vsel %vm1490_vm3, %v2474_v62, %v1487_v56 }
 0x7e8   : > { %v1493_v6 = vmul.f32 %v1491_v5, %v1459_v45 }
 0x7ea   : > { %v1495_v8 = vand.u32 2147483647, %v1493_v6 }
 0x7ec   : > { %v1499_v9 = vsel %vm667_vm1, %v1495_v8, -inf }
 0x7ed   : > { %1500 = vmax.xlane.f32.xlu1 %v1499_v9 }
 0x852   : > { %v1498_v10 = vpop.xlane.xlu1 %1497 }
 0x860   : > { %v1501_v14 = vpop.xlane.xlu1 %1500 }
 0x861   : > { %v1502_v16 = vmax.f32 %v1498_v10, %v1501_v14 }
 0x863   : > { %v1503_v17 = vrot.slane %v1502_v16, 4 }
 0x865   : > { %v1504_v15 = vmax.f32 %v1502_v16, %v1503_v17 }
 0x867   : > { %v1505_v21 = vrot.slane %v1504_v15, 2 }
 0x869   : > { %v1506_v19 = vmax.f32 %v1504_v15, %v1505_v21 }
 0x86b   : > { %v1507_v22 = vrot.slane %v1506_v19, 1 }
 0x86d   : > { %v1508_v23 = vmax.f32 %v1506_v19, %v1507_v22 }
 0x86f   : > { %2475 = vrcp.f32 %v1508_v23  ;;  %v1520_v25 = vand.u32 2147483648, %v1508_v23  ;;  %v1518_v30 = vand.u32 2147483647, %v1508_v23  ;;  %vm1514_vm5 = vweird.f32 %v1508_v23 }
 0x870   : > { %v1562_v54 = vmul.f32 %v1508_v23, %v2769_v43 }
 0x871   : > { %v1521_v31 = vor.u32 1.1754944e-38, %v1520_v25  ;;  %vm1519_vm7 = vcmp.eq.f32.partialorder %v1518_v30, 8.507059e+37 }
 0x875   : > { %v2476_v24 = vpop.eup %2475 }
 0x876   : > { %v1510_v26 = vmul.f32 %v2476_v24, %v1508_v23  ;;  %vm1515_vm4 = vweird.f32 %v2476_v24 }
 0x877   : > { %vm1516_vm6 = vmor %vm1514_vm5, %vm1515_vm4 }
 0x878   : > { %v1511_v27 = vsub.f32 1.0, %v1510_v26 }
 0x87a   : > { %v1512_v28 = vmul.f32 %v2476_v24, %v1511_v27 }
 0x87c   : > { %v1513_v61 = vadd.f32 %v2476_v24, %v1512_v28 }
 0x87e   : > { %v1517_v20 = vsel %vm1516_vm6, %v2476_v24, %v1513_v61 }
 0x87f   : > { %v1522_v32 = vsel %vm1519_vm7, %v1521_v31, %v1517_v20 }
 0x880   : > { %v1523_v33 = vmul.f32 128.0, %v1522_v32 }
 0x882   : > { %v1524_v34 = vmul.f32 %v1523_v33, %v1492_v60  ;;  %v1525_v35 = vmul.f32 %v1523_v33, %v1493_v6 }
 0x884   : > { %v2307_v36 = vcvt.f32.s32 %v1524_v34  ;;  %v2315_v37 = vcvt.f32.s32 %v1525_v35  ;;  %v2305_v38 = vand.u32 2147483647, %v1524_v34  ;;  %v2310_v42 = vand.u32 2147483648, %v1524_v34 }
 0x885   : > { %v2313_v44 = vand.u32 2147483647, %v1525_v35  ;;  %v2318_v46 = vand.u32 2147483648, %v1525_v35 }
 0x886   : > { %v2308_v7 = vcvt.s32.f32 %v2307_v36  ;;  %v2316_v40 = vcvt.s32.f32 %v2315_v37  ;;  %vm2306_vm8 = vcmp.lt.f32.partialorder %v2305_v38, 8388608.0 }
 0x887   : > { %vm2314_vm9 = vcmp.lt.f32.partialorder %v2313_v44, 8388608.0 }
 0x888   : > { %v2309_v41 = vand.u32 2147483647, %v2308_v7  ;;  %v2317_v45 = vand.u32 2147483647, %v2316_v40 }
 0x88a   : > { %v2311_v47 = vor.u32 %v2310_v42, %v2309_v41  ;;  %v2319_v49 = vor.u32 %v2318_v46, %v2317_v45 }
 0x88c   : > { %v2312_v50 = vsel %vm2306_vm8, %v2311_v47, %v1524_v34  ;;  %v2320_v52 = vsel %vm2314_vm9, %v2319_v49, %v1525_v35 }
 0x88d   : > { %v1528_v53 = vpack.c.bf16 %v2320_v52, %v2312_v50  ;;  %v2509_v50 = vld [vmem:[%s2671_s23] ss:$0 sm:$0xff] }
 0x88f   : > { %2244 = vmatmul.msk.bf16.vlgmr.msra.gmra.mxu0 %vm667_vm1, %v1528_v53 }
 0x90c   : > { %v1557_v39 = vpop.f32.mrf.mxu0 }
 0x90d   : > { %v1563_v57 = vmul.f32 %v1562_v54, %v1557_v39 }
 0x90f   : > { %v1569_v55 = vmul.f32 %v2412_v11, %v1563_v57 }
 0x911   : > { %v2945_v59 = vadd.f32 %v2507_v58, %v1569_v55  ;;  %v2510_v58 = vld [vmem:[%s2677_s26] ss:$0 sm:$0xff] }
 0x913   : > { %v1573_v48 = vsel %vm667_vm1, %v2945_v59, 0.0 }
 0x914   : > { %1574 = vadd.xlane.f32.xlu1 %v1573_v48  ;;  %v1559_v51 = vpop.f32.mrf.mxu0 }
 0x915   : > { %v1564_v60 = vmul.f32 %v1562_v54, %v1559_v51 }
 0x917   : > { %v1570_v62 = vmul.f32 %v2412_v11, %v1564_v60 }
 0x919   : > { %v2949_v0 = vadd.f32 %v2508_v63, %v1570_v62 }
 0x91b   : > { %v1576_v3 = vsel %vm667_vm1, %v2949_v0, 0.0 }
 0x91c   : > { %1577 = vadd.xlane.f32.xlu1 %v1576_v3 }
 0x987   : > { %v1575_v1 = vpop.xlane.xlu1 %1574 }
 0x988   : > { %v1579_v2 = vmul.f32 %v1575_v1, %v2734_v12 }
 0x98a   : > { %v1581_v4 = vsub.f32 %v2945_v59, %v1579_v2 }
 0x98c   : > { %v1583_v56 = vmul.f32 %v1581_v4, %v1581_v4  ;;  %v1617_v52 = vmul.f32 %v2509_v50, %v1581_v4 }
 0x98e   : > { %v1585_v5 = vsel %vm667_vm1, %v1583_v56, 0.0 }
 0x98f   : > { %1586 = vadd.xlane.f32.xlu2 %v1585_v5  ;;  %v1578_v6 = vpop.xlane.xlu1 %1577 }
 0x990   : > { %v1580_v8 = vmul.f32 %v1578_v6, %v2734_v12 }
 0x992   : > { %v2958_v9 = vsub.f32 %v2949_v0, %v1580_v8 }
 0x994   : > { %v1584_v10 = vmul.f32 %v2958_v9, %v2958_v9  ;;  %v1618_v1 = vmul.f32 %v2509_v50, %v2958_v9 }
 0x996   : > { %v1588_v18 = vsel %vm667_vm1, %v1584_v10, 0.0 }
 0x997   : > { %1589 = vadd.xlane.f32.xlu0 %v1588_v18 }
 0xa02   : > { %v1587_v13 = vpop.xlane.xlu2 %1586 }
 0xa03   : > { %v1591_v14 = vmul.f32 %v1587_v13, %v2748_v29 }
 0xa05   : > { %2477 = vrsqrt.f32 %v1591_v14  ;;  %vm1600_vm2 = vcmp.eq.f32.partialorder %v1591_v14, inf  ;;  %v1603_v30 = vand.u32 2147483648, %v1591_v14  ;;  %vm1602_vm10 = vcmp.eq.f32.partialorder %v1591_v14, 0.0 }
 0xa0a   : > { %v1590_v16 = vpop.xlane.xlu0 %1589 }
 0xa0b   : > { %v2478_v17 = vpop.eup %2477  ;;  %v1592_v15 = vmul.f32 %v1590_v16, %v2748_v29 }
 0xa0c   : > { %v1594_v21 = vmul.f32 %v2478_v17, %v1591_v14 }
 0xa0d   : > { %2479 = vrsqrt.f32 %v1592_v15  ;;  %vm1612_vm11 = vcmp.eq.f32.partialorder %v1592_v15, inf  ;;  %v1615_v35 = vand.u32 2147483648, %v1592_v15  ;;  %vm1614_vm14 = vcmp.eq.f32.partialorder %v1592_v15, 0.0 }
 0xa0e   : > { %v1595_v19 = vmul.f32 %v2478_v17, %v1594_v21 }
 0xa10   : > { %v1596_v22 = vmul.f32 0.5, %v1595_v19 }
 0xa12   : > { %v1597_v23 = vsub.f32 1.5, %v1596_v22 }
 0xa13   : > { %v2480_v24 = vpop.eup %2479 }
 0xa14   : > { %v1598_v26 = vmul.f32 %v2478_v17, %v1597_v23  ;;  %v1606_v27 = vmul.f32 %v2480_v24, %v1592_v15 }
 0xa16   : > { %v1599_v25 = vmul.f32 %v1598_v26, %v1591_v14  ;;  %v1607_v28 = vmul.f32 %v2480_v24, %v1606_v27 }
 0xa18   : > { %v1608_v61 = vmul.f32 0.5, %v1607_v28  ;;  %v1601_v31 = vsel %vm1600_vm2, %v1591_v14, %v1599_v25 }
 0xa19   : > { %v1604_v20 = vsel %vm1602_vm10, %v1603_v30, %v1601_v31 }
 0xa1a   : > { %v1609_v32 = vsub.f32 1.5, %v1608_v61  ;;  %v1619_v33 = vadd.f32 1e-05, %v1604_v20 }
 0xa1c   : > { %v1610_v34 = vmul.f32 %v2480_v24, %v1609_v32  ;;  %2481 = vrcp.f32 %v1619_v33  ;;  %v1632_v42 = vand.u32 2147483648, %v1619_v33  ;;  %v1630_v45 = vand.u32 2147483647, %v1619_v33 }
 0xa1d   : > { %vm1626_vm13 = vweird.f32 %v1619_v33 }
 0xa1e   : > { %v1611_v29 = vmul.f32 %v1610_v34, %v1592_v15  ;;  %v1633_v49 = vor.u32 1.1754944e-38, %v1632_v42  ;;  %vm1631_vm0 = vcmp.eq.f32.partialorder %v1630_v45, 8.507059e+37 }
 0xa20   : > { %v1613_v36 = vsel %vm1612_vm11, %v1592_v15, %v1611_v29 }
 0xa21   : > { %v1616_v37 = vsel %vm1614_vm14, %v1615_v35, %v1613_v36 }
 0xa22   : > { %v2482_v7 = vpop.eup %2481  ;;  %v1620_v38 = vadd.f32 1e-05, %v1616_v37 }
 0xa23   : > { %v1622_v40 = vmul.f32 %v2482_v7, %v1619_v33  ;;  %vm1627_vm12 = vweird.f32 %v2482_v7 }
 0xa24   : > { %2483 = vrcp.f32 %v1620_v38  ;;  %vm1628_vm15 = vmor %vm1626_vm13, %vm1627_vm12  ;;  %v1647_v55 = vand.u32 2147483648, %v1620_v38  ;;  %v1645_v60 = vand.u32 2147483647, %v1620_v38  ;;  %vm1641_vm4 = vweird.f32 %v1620_v38 }
 0xa25   : > { %v1623_v41 = vsub.f32 1.0, %v1622_v40 }
 0xa26   : > { %v1648_v3 = vor.u32 1.1754944e-38, %v1647_v55  ;;  %vm1646_vm6 = vcmp.eq.f32.partialorder %v1645_v60, 8.507059e+37 }
 0xa27   : > { %v1624_v44 = vmul.f32 %v2482_v7, %v1623_v41 }
 0xa29   : > { %v1625_v46 = vadd.f32 %v2482_v7, %v1624_v44 }
 0xa2a   : > { %v2484_v47 = vpop.eup %2483 }
 0xa2b   : > { %v1629_v53 = vsel %vm1628_vm15, %v2482_v7, %v1625_v46  ;;  %v1637_v54 = vmul.f32 %v2484_v47, %v1620_v38  ;;  %vm1642_vm3 = vweird.f32 %v2484_v47 }
 0xa2c   : > { %v1634_v11 = vsel %vm1631_vm0, %v1633_v49, %v1629_v53  ;;  %vm1643_vm5 = vmor %vm1641_vm4, %vm1642_vm3 }
 0xa2d   : > { %v1635_v39 = vmul.f32 %v1634_v11, %v1617_v52  ;;  %v1638_v57 = vsub.f32 1.0, %v1637_v54 }
 0xa2f   : > { %v1651_v48 = vadd.f32 %v2510_v58, %v1635_v39  ;;  %v1639_v51 = vmul.f32 %v2484_v47, %v1638_v57 }
 0xa31   : > { %v1653_v62 = vsel %vm667_vm1, %v1651_v48, 0.0  ;;  %v1640_v63 = vadd.f32 %v2484_v47, %v1639_v51  ;;  %v2283_v51 = vld [vmem:[%s2694_s15] sm:$0xff] }
 0xa32   : > { %1654 = vadd.xlane.f32.xlu1 %v1653_v62 }
 0xa33   : > { %v1644_v2 = vsel %vm1643_vm5, %v2484_v47, %v1640_v63 }
 0xa34   : > { %v1649_v4 = vsel %vm1646_vm6, %v1648_v3, %v1644_v2 }
 0xa35   : > { %v1650_v56 = vmul.f32 %v1649_v4, %v1618_v1 }
 0xa37   : > { %v1652_v5 = vadd.f32 %v2510_v58, %v1650_v56 }
 0xa39   : > { %v1656_v6 = vsel %vm667_vm1, %v1652_v5, 0.0 }
 0xa3a   : > { %1657 = vadd.xlane.f32.xlu2 %v1656_v6 }
 0xaa5   : > { %v1655_v8 = vpop.xlane.xlu1 %1654 }
 0xaa6   : > { %v1659_v10 = vmul.f32 %v1655_v8, %v2734_v12 }
 0xaa8   : > { %v1661_v18 = vsub.f32 %v1651_v48, %v1659_v10  ;;  %v2284_v48 = vld [vmem:[%s2694_s15 + $0x8] sm:$0xff] }
 0xaa9   : > { %1772 = vmatpush.bf16.msra.mxu1 %v2284_v48 }
 0xaaa   : > { %v1663_v13 = vmul.f32 %v1661_v18, %v1661_v18 }
 0xaac   : > { %v1665_v14 = vsel %vm667_vm1, %v1663_v13, 0.0 }
 0xaad   : > { %v1658_v16 = vpop.xlane.xlu2 %1657  ;;  %1666 = vadd.xlane.f32.xlu0 %v1665_v14  ;;  %1773 = vmatpush.bf16.msra.mxu1 %v2283_v51 }
 0xaae   : > { %v1660_v17 = vmul.f32 %v1658_v16, %v2734_v12 }
 0xab0   : > { %v1662_v9 = vsub.f32 %v1652_v5, %v1660_v17 }
 0xab2   : > { %v1664_v15 = vmul.f32 %v1662_v9, %v1662_v9 }
 0xab4   : > { %v1668_v21 = vsel %vm667_vm1, %v1664_v15, 0.0 }
 0xab5   : > { %1669 = vadd.xlane.f32.xlu1 %v1668_v21 }
 0xb20   : > { %v1667_v19 = vpop.xlane.xlu0 %1666 }
 0xb21   : > { %v1671_v22 = vmul.f32 %v1667_v19, %v2734_v12 }
 0xb23   : > { %v1673_v23 = vadd.f32 1e-05, %v1671_v22 }
 0xb25   : > { %2485 = vrsqrt.f32 %v1673_v23  ;;  %vm1681_vm8 = vweird.f32 %v1673_v23 }
 0xb28   : > { %v1670_v24 = vpop.xlane.xlu1 %1669 }
 0xb29   : > { %v1672_v26 = vmul.f32 %v1670_v24, %v2734_v12 }
 0xb2b   : > { %v2486_v27 = vpop.eup %2485  ;;  %v1674_v25 = vadd.f32 1e-05, %v1672_v26 }
 0xb2c   : > { %v1676_v28 = vmul.f32 %v2486_v27, %v1673_v23  ;;  %vm1682_vm7 = vweird.f32 %v2486_v27 }
 0xb2d   : > { %2487 = vrsqrt.f32 %v1674_v25  ;;  %vm1683_vm9 = vmor %vm1681_vm8, %vm1682_vm7  ;;  %vm1691_vm10 = vweird.f32 %v1674_v25 }
 0xb2e   : > { %v1677_v30 = vmul.f32 %v2486_v27, %v1676_v28 }
 0xb30   : > { %v1678_v61 = vmul.f32 0.5, %v1677_v30 }
 0xb32   : > { %v1679_v31 = vsub.f32 1.5, %v1678_v61 }
 0xb33   : > { %v2488_v20 = vpop.eup %2487 }
 0xb34   : > { %v1686_v32 = vmul.f32 %v2488_v20, %v1674_v25  ;;  %v1680_v33 = vmul.f32 %v2486_v27, %v1679_v31  ;;  %vm1692_vm2 = vweird.f32 %v2488_v20 }
 0xb35   : > { %vm1693_vm11 = vmor %vm1691_vm10, %vm1692_vm2 }
 0xb36   : > { %v1687_v34 = vmul.f32 %v2488_v20, %v1686_v32  ;;  %v1684_v29 = vsel %vm1683_vm9, %v2486_v27, %v1680_v33 }
 0xb37   : > { %v1695_v35 = vmul.f32 %v1684_v29, %v1661_v18 }
 0xb38   : > { %v1688_v36 = vmul.f32 0.5, %v1687_v34 }
 0xb39   : > { %v1697_v37 = vsel %vm667_vm1, %v1695_v35, inf }
 0xb3a   : > { %v1689_v12 = vsub.f32 1.5, %v1688_v36  ;;  %1698 = vmin.xlane.f32.xlu2 %v1697_v37 }
 0xb3c   : > { %v1690_v7 = vmul.f32 %v2488_v20, %v1689_v12 }
 0xb3e   : > { %v1694_v38 = vsel %vm1693_vm11, %v2488_v20, %v1690_v7  ;;  %v2413_v7 = vld [vmem:[%s643_s22] ss:$0 sm:$0xff] }
 0xb3f   : > { %v1696_v40 = vmul.f32 %v1694_v38, %v1662_v9 }
 0xb41   : > { %v1700_v41 = vsel %vm667_vm1, %v1696_v40, inf }
 0xb42   : > { %1701 = vmin.xlane.f32.xlu0 %v1700_v41 }
 0xbad   : > { %v1699_v42 = vpop.xlane.xlu2 %1698 }
 0xbb5   : > { %v1702_v44 = vpop.xlane.xlu0 %1701 }
 0xbb6   : > { %v1703_v45 = vmin.f32 %v1699_v42, %v1702_v44 }
 0xbb8   : > { %v1704_v46 = vrot.slane %v1703_v45, 4 }
 0xbba   : > { %v1705_v47 = vmin.f32 %v1703_v45, %v1704_v46 }
 0xbbc   : > { %v1706_v49 = vrot.slane %v1705_v47, 2 }
 0xbbe   : > { %v1707_v50 = vmin.f32 %v1705_v47, %v1706_v49 }
 0xbc0   : > { %v1708_v52 = vrot.slane %v1707_v50, 1 }
 0xbc2   : > { %v2978_v53 = vmin.f32 %v1707_v50, %v1708_v52 }
 0xbc4   : > { %v1711_v54 = vsub.f32 %v1696_v40, %v2978_v53  ;;  %v1710_v11 = vsub.f32 %v1695_v35, %v2978_v53  ;;  %v2414_v40 = vld [vmem:[%s649_s28] ss:$0 sm:$0xff] }
 0xbc6   : > { %v1713_v39 = vand.u32 2147483647, %v1711_v54  ;;  %v1712_v57 = vand.u32 2147483647, %v1710_v11 }
 0xbc8   : > { %v1717_v55 = vsel %vm667_vm1, %v1713_v39, -inf  ;;  %v1714_v58 = vsel %vm667_vm1, %v1712_v57, -inf }
 0xbc9   : > { %1718 = vmax.xlane.f32.xlu2 %v1717_v55  ;;  %1715 = vmax.xlane.f32.xlu1 %v1714_v58 }
 0xc3c   : > { %v1719_v60 = vpop.xlane.xlu2 %1718  ;;  %v1716_v62 = vpop.xlane.xlu1 %1715 }
 0xc3d   : > { %v1720_v63 = vmax.f32 %v1716_v62, %v1719_v60 }
 0xc3f   : > { %v1721_v3 = vrot.slane %v1720_v63, 4 }
 0xc41   : > { %v1722_v1 = vmax.f32 %v1720_v63, %v1721_v3 }
 0xc43   : > { %v1723_v2 = vrot.slane %v1722_v1, 2 }
 0xc45   : > { %v1724_v4 = vmax.f32 %v1722_v1, %v1723_v2 }
 0xc47   : > { %v1725_v56 = vrot.slane %v1724_v4, 1 }
 0xc49   : > { %v1726_v5 = vmax.f32 %v1724_v4, %v1725_v56 }
 0xc4b   : > { %2489 = vrcp.f32 %v1726_v5  ;;  %v1738_v18 = vand.u32 2147483648, %v1726_v5  ;;  %v1736_v14 = vand.u32 2147483647, %v1726_v5  ;;  %vm1732_vm12 = vweird.f32 %v1726_v5 }
 0xc4c   : > { %v1780_v36 = vmul.f32 %v1726_v5, %v2769_v43 }
 0xc4d   : > { %v1739_v17 = vor.u32 1.1754944e-38, %v1738_v18  ;;  %vm1737_vm15 = vcmp.eq.f32.partialorder %v1736_v14, 8.507059e+37 }
 0xc51   : > { %v2490_v6 = vpop.eup %2489 }
 0xc52   : > { %v1728_v8 = vmul.f32 %v2490_v6, %v1726_v5  ;;  %vm1733_vm14 = vweird.f32 %v2490_v6 }
 0xc53   : > { %vm1734_vm13 = vmor %vm1732_vm12, %vm1733_vm14  ;;  %vm1877_vm14 = vcmask 523264  }
 0xc54   : > { %v1729_v10 = vsub.f32 1.0, %v1728_v8 }
 0xc56   : > { %v1730_v13 = vmul.f32 %v2490_v6, %v1729_v10 }
 0xc58   : > { %v1731_v16 = vadd.f32 %v2490_v6, %v1730_v13 }
 0xc5a   : > { %v1735_v9 = vsel %vm1734_vm13, %v2490_v6, %v1731_v16 }
 0xc5b   : > { %v1740_v15 = vsel %vm1737_vm15, %v1739_v17, %v1735_v9 }
 0xc5c   : > { %v1741_v21 = vmul.f32 128.0, %v1740_v15 }
 0xc5e   : > { %v1742_v19 = vmul.f32 %v1741_v21, %v1710_v11  ;;  %v1743_v22 = vmul.f32 %v1741_v21, %v1711_v54 }
 0xc60   : > { %v2323_v23 = vcvt.f32.s32 %v1742_v19  ;;  %v2331_v24 = vcvt.f32.s32 %v1743_v22  ;;  %v2321_v27 = vand.u32 2147483647, %v1742_v19  ;;  %v2326_v30 = vand.u32 2147483648, %v1742_v19 }
 0xc61   : > { %v2329_v61 = vand.u32 2147483647, %v1743_v22  ;;  %v2334_v20 = vand.u32 2147483648, %v1743_v22 }
 0xc62   : > { %v2324_v26 = vcvt.s32.f32 %v2323_v23  ;;  %v2332_v25 = vcvt.s32.f32 %v2331_v24  ;;  %vm2322_vm0 = vcmp.lt.f32.partialorder %v2321_v27, 8388608.0 }
 0xc63   : > { %vm2330_vm3 = vcmp.lt.f32.partialorder %v2329_v61, 8388608.0 }
 0xc64   : > { %v2325_v28 = vand.u32 2147483647, %v2324_v26  ;;  %v2333_v31 = vand.u32 2147483647, %v2332_v25 }
 0xc66   : > { %v2327_v32 = vor.u32 %v2326_v30, %v2325_v28  ;;  %v2335_v33 = vor.u32 %v2334_v20, %v2333_v31 }
 0xc68   : > { %v2328_v34 = vsel %vm2322_vm0, %v2327_v32, %v1742_v19  ;;  %v2336_v29 = vsel %vm2330_vm3, %v2335_v33, %v1743_v22 }
 0xc69   : > { %v1746_v35 = vpack.c.bf16 %v2336_v29, %v2328_v34 }
 0xc6b   : > { %2253 = vmatmul.msk.bf16.vlgmr.msra.gmra.mxu1 %vm667_vm1, %v1746_v35 }
 0xce8   : > { %v1775_v37 = vpop.f32.mrf.mxu1 }
 0xce9   : > { %v1781_v12 = vmul.f32 %v1780_v36, %v1775_v37 }
 0xceb   : > { %v1783_v38 = vadd.f32 %v1781_v12, %v2978_v53 }
 0xced   : > { %v1789_v41 = vmul.f32 %v2413_v7, %v1783_v38  ;;  %v2569_v38 = vmov 1.0  }
 0xcef   : > { %v2999_v42 = vadd.f32 %v2414_v40, %v1789_v41 }
 0xcf0   : > { %v1777_v44 = vpop.f32.mrf.mxu1 }
 0xcf1   : > { %v1782_v45 = vmul.f32 %v1780_v36, %v1777_v44  ;;  %v3002_v46 = vmul.f32 0.70710677, %v2999_v42 }
 0xcf3   : > { %v1784_v47 = vadd.f32 %v1782_v45, %v2978_v53  ;;  %v1805_v49 = vand.u32 2147483647, %v3002_v46  ;;  %vm1801_vm11 = vcmp.lt.f32.partialorder %v3002_v46, 0.0 }
 0xcf5   : > { %v1790_v50 = vmul.f32 %v2413_v7, %v1784_v47  ;;  %v1807_v52 = vmul.f32 0.3275911, %v1805_v49  ;;  %v1859_v5 = vsub.f32 0.0, %v1805_v49  ;;  %v1797_v47 = vmul.f32 0.5, %v2999_v42 }
 0xcf7   : > { %v1809_v54 = vadd.f32 1.0, %v1807_v52  ;;  %v3006_v11 = vadd.f32 %v2414_v40, %v1790_v50  ;;  %v1861_v14 = vmul.f32 %v1859_v5, %v1805_v49  ;;  %v1803_v40 = vsel %vm1801_vm11, -1.0, %v2569_v38 }
 0xcf9   : > { %2491 = vrcp.f32 %v1809_v54  ;;  %v3009_v39 = vmul.f32 0.70710677, %v3006_v11  ;;  %v1822_v53 = vand.u32 2147483648, %v1809_v54  ;;  %v1820_v63 = vand.u32 2147483647, %v1809_v54 }
 0xcfa   : > { %vm1816_vm5 = vweird.f32 %v1809_v54  ;;  %v1863_v22 = vmul.f32 1.442695, %v1861_v14 }
 0xcfb   : > { %v1806_v57 = vand.u32 2147483647, %v3009_v39  ;;  %v1823_v1 = vor.u32 1.1754944e-38, %v1822_v53  ;;  %vm1821_vm7 = vcmp.eq.f32.partialorder %v1820_v63, 8.507059e+37  ;;  %vm1802_vm12 = vcmp.lt.f32.partialorder %v3009_v39, 0.0 }
 0xcfd   : > { %v1808_v55 = vmul.f32 0.3275911, %v1806_v57  ;;  %v1860_v27 = vsub.f32 0.0, %v1806_v57 }
 0xcff   : > { %v2492_v58 = vpop.eup %2491  ;;  %v1810_v51 = vadd.f32 1.0, %v1808_v55  ;;  %v1862_v31 = vmul.f32 %v1860_v27, %v1806_v57 }
 0xd00   : > { %v1812_v48 = vmul.f32 %v2492_v58, %v1809_v54  ;;  %vm1817_vm4 = vweird.f32 %v2492_v58 }
 0xd01   : > { %2493 = vrcp.f32 %v1810_v51  ;;  %vm1818_vm6 = vmor %vm1816_vm5, %vm1817_vm4  ;;  %v1837_v13 = vand.u32 2147483648, %v1810_v51  ;;  %v1835_v17 = vand.u32 2147483647, %v1810_v51  ;;  %vm1831_vm9 = vweird.f32 %v1810_v51 }
 0xd02   : > { %v1813_v60 = vsub.f32 1.0, %v1812_v48  ;;  %2495 = vpow2.f32 %v1863_v22  ;;  %v1865_v29 = vmul.f32 1.442695, %v1862_v31 }
 0xd03   : > { %v1838_v19 = vor.u32 1.1754944e-38, %v1837_v13  ;;  %vm1836_vm10 = vcmp.eq.f32.partialorder %v1835_v17, 8.507059e+37 }
 0xd04   : > { %v1814_v62 = vmul.f32 %v2492_v58, %v1813_v60  ;;  %2497 = vpow2.f32 %v1865_v29 }
 0xd06   : > { %v1815_v3 = vadd.f32 %v2492_v58, %v1814_v62  ;;  %v2570_v62 = vmov 64.0  }
 0xd07   : > { %v2494_v2 = vpop.eup %2493  ;;  %2499 = vrcp.f32 %v2570_v62 }
 0xd08   : > { %v1819_v4 = vsel %vm1818_vm6, %v2492_v58, %v1815_v3  ;;  %v1827_v6 = vmul.f32 %v2494_v2, %v1810_v51  ;;  %vm1832_vm8 = vweird.f32 %v2494_v2  ;;  %v2496_v35 = vpop.eup %2495  ;;  %v1804_v58 = vsel %vm1802_vm12, -1.0, %v2569_v38 }
 0xd09   : > { %v1824_v56 = vsel %vm1821_vm7, %v1823_v1, %v1819_v4  ;;  %vm1833_vm2 = vmor %vm1831_vm9, %vm1832_vm8  ;;  %v1798_v51 = vmul.f32 0.5, %v3006_v11 }
 0xd0a   : > { %v1841_v8 = vmul.f32 1.0614054, %v1824_v56  ;;  %v1828_v10 = vsub.f32 1.0, %v1827_v6  ;;  %v2498_v52 = vpop.eup %2497 }
 0xd0c   : > { %v1843_v18 = vadd.f32 -1.4531521, %v1841_v8  ;;  %v1829_v16 = vmul.f32 %v2494_v2, %v1828_v10 }
 0xd0d   : > { %v2500_v63 = vpop.eup %2499 }
 0xd0e   : > { %v1845_v9 = vmul.f32 %v1843_v18, %v1824_v56  ;;  %v1830_v15 = vadd.f32 %v2494_v2, %v1829_v16  ;;  %v1885_v3 = vmul.f32 64.0, %v2500_v63  ;;  %vm1889_vm13 = vweird.f32 %v2500_v63 }
 0xd10   : > { %v1847_v21 = vadd.f32 1.4214138, %v1845_v9  ;;  %v1834_v23 = vsel %vm1833_vm2, %v2494_v2, %v1830_v15  ;;  %v1886_v1 = vsub.f32 1.0, %v1885_v3 }
 0xd11   : > { %v1839_v26 = vsel %vm1836_vm10, %v1838_v19, %v1834_v23 }
 0xd12   : > { %v1849_v24 = vmul.f32 %v1847_v21, %v1824_v56  ;;  %v1842_v25 = vmul.f32 1.0614054, %v1839_v26  ;;  %v1887_v39 = vmul.f32 %v2500_v63, %v1886_v1 }
 0xd14   : > { %v1851_v28 = vadd.f32 -0.28449672, %v1849_v24  ;;  %v1844_v30 = vadd.f32 -1.4531521, %v1842_v25  ;;  %v1888_v2 = vadd.f32 %v2500_v63, %v1887_v39 }
 0xd16   : > { %v1853_v61 = vmul.f32 %v1851_v28, %v1824_v56  ;;  %v1846_v20 = vmul.f32 %v1844_v30, %v1839_v26  ;;  %v1890_v4 = vsel %vm1889_vm13, %v2500_v63, %v1888_v2 }
 0xd18   : > { %v1855_v32 = vadd.f32 0.2548296, %v1853_v61  ;;  %v1848_v33 = vadd.f32 1.4214138, %v1846_v20 }
 0xd1a   : > { %v1857_v34 = vmul.f32 %v1855_v32, %v1824_v56  ;;  %v1850_v36 = vmul.f32 %v1848_v33, %v1839_v26 }
 0xd1c   : > { %v1867_v37 = vmul.f32 %v2496_v35, %v1857_v34  ;;  %v1852_v12 = vadd.f32 -0.28449672, %v1850_v36 }
 0xd1e   : > { %v1869_v7 = vsub.f32 1.0, %v1867_v37  ;;  %v1854_v41 = vmul.f32 %v1852_v12, %v1839_v26 }
 0xd20   : > { %v1871_v44 = vmul.f32 %v1869_v7, %v1803_v40  ;;  %v1856_v45 = vadd.f32 0.2548296, %v1854_v41  ;;  %v2288_v40 = vld [vmem:[%s2699_s4 + $0x18] sm:$0xff]  ;;  %v2287_v41 = vld [vmem:[%s2699_s4 + $0x10] sm:$0xff] }
 0xd21   : > { %2003 = vmatpush.bf16.msra.mxu3 %v2288_v40 }
 0xd22   : > { %v1873_v49 = vadd.f32 1.0, %v1871_v44  ;;  %v1858_v50 = vmul.f32 %v1856_v45, %v1839_v26 }
 0xd24   : > { %v1875_v54 = vmul.f32 %v1873_v49, %v1797_v47  ;;  %v1868_v57 = vmul.f32 %v2498_v52, %v1858_v50  ;;  %v2286_v49 = vld [vmem:[%s2699_s4 + $0x8] sm:$0xff] }
 0xd25   : > { %2004 = vmatpush.bf16.msra.mxu3 %v2287_v41 }
 0xd26   : > { %v1878_v46 = vsel %vm1877_vm14, %v1875_v54, 0.0  ;;  %v1870_v55 = vsub.f32 1.0, %v1868_v57 }
 0xd27   : > { %1879 = vadd.xlane.f32.xlu0 %v1878_v46 }
 0xd28   : > { %v1872_v48 = vmul.f32 %v1870_v55, %v1804_v58 }
 0xd29   : > { %2005 = vmatpush.bf16.msra.mxu3 %v2286_v49 }
 0xd2a   : > { %v1874_v60 = vadd.f32 1.0, %v1872_v48 }
 0xd2c   : > { %v1876_v53 = vmul.f32 %v1874_v60, %v1798_v51 }
 0xd2e   : > { %v1881_v42 = vsel %vm1877_vm14, %v1876_v53, 0.0 }
 0xd2f   : > { %1882 = vadd.xlane.f32.xlu1 %v1881_v42 }
 0xd9a   : > { %v1880_v56 = vpop.xlane.xlu0 %1879 }
 0xd9b   : > { %v1891_v5 = vmul.f32 %v1890_v4, %v1880_v56 }
 0xd9d   : > { %v1893_v6 = vsub.f32 %v1875_v54, %v1891_v5  ;;  %v2285_v54 = vld [vmem:[%s2699_s4] sm:$0xff] }
 0xd9e   : > { %2006 = vmatpush.bf16.msra.mxu3 %v2285_v54 }
 0xd9f   : > { %v1895_v8 = vmul.f32 %v1893_v6, %v1893_v6 }
 0xda1   : > { %v1897_v11 = vsel %vm1877_vm14, %v1895_v8, 0.0 }
 0xda2   : > { %1898 = vadd.xlane.f32.xlu2 %v1897_v11  ;;  %v1883_v10 = vpop.xlane.xlu1 %1882 }
 0xda3   : > { %v1892_v18 = vmul.f32 %v1890_v4, %v1883_v10 }
 0xda5   : > { %v1894_v13 = vsub.f32 %v1876_v53, %v1892_v18 }
 0xda7   : > { %v1896_v14 = vmul.f32 %v1894_v13, %v1894_v13 }
 0xda9   : > { %v1900_v16 = vsel %vm1877_vm14, %v1896_v14, 0.0 }
 0xdaa   : > { %1901 = vadd.xlane.f32.xlu0 %v1900_v16 }
 0xe15   : > { %v1899_v17 = vpop.xlane.xlu2 %1898 }
 0xe16   : > { %v1903_v9 = vmul.f32 %v1899_v17, %v1890_v4 }
 0xe18   : > { %v1905_v15 = vadd.f32 1e-05, %v1903_v9 }
 0xe1a   : > { %2501 = vrsqrt.f32 %v1905_v15  ;;  %vm1913_vm0 = vweird.f32 %v1905_v15 }
 0xe1d   : > { %v1902_v21 = vpop.xlane.xlu0 %1901 }
 0xe1e   : > { %v1904_v19 = vmul.f32 %v1902_v21, %v1890_v4 }
 0xe20   : > { %v2502_v22 = vpop.eup %2501  ;;  %v1906_v24 = vadd.f32 1e-05, %v1904_v19 }
 0xe21   : > { %v1908_v23 = vmul.f32 %v2502_v22, %v1905_v15  ;;  %vm1914_vm15 = vweird.f32 %v2502_v22 }
 0xe22   : > { %2503 = vrsqrt.f32 %v1906_v24  ;;  %vm1915_vm3 = vmor %vm1913_vm0, %vm1914_vm15  ;;  %vm1923_vm5 = vweird.f32 %v1906_v24 }
 0xe23   : > { %v1909_v26 = vmul.f32 %v2502_v22, %v1908_v23 }
 0xe25   : > { %v1910_v27 = vmul.f32 0.5, %v1909_v26 }
 0xe27   : > { %v1911_v25 = vsub.f32 1.5, %v1910_v27 }
 0xe28   : > { %v2504_v28 = vpop.eup %2503 }
 0xe29   : > { %v1912_v30 = vmul.f32 %v2502_v22, %v1911_v25  ;;  %v1918_v61 = vmul.f32 %v2504_v28, %v1906_v24  ;;  %vm1924_vm4 = vweird.f32 %v2504_v28  ;;  %v2415_v24 = vld [vmem:[%s646_s27] ss:$0 sm:$0xff] }
 0xe2a   : > { %vm1925_vm6 = vmor %vm1923_vm5, %vm1924_vm4  ;;  %v2416_v25 = vld [vmem:[%s652_s1] ss:$0 sm:$0xff] }
 0xe2b   : > { %v1916_v31 = vsel %vm1915_vm3, %v2502_v22, %v1912_v30  ;;  %v1919_v20 = vmul.f32 %v2504_v28, %v1918_v61 }
 0xe2c   : > { %v1927_v32 = vmul.f32 %v1916_v31, %v1893_v6 }
 0xe2d   : > { %v1920_v33 = vmul.f32 0.5, %v1919_v20 }
 0xe2e   : > { %v1929_v34 = vand.u32 2147483647, %v1927_v32 }
 0xe2f   : > { %v1921_v29 = vsub.f32 1.5, %v1920_v33 }
 0xe30   : > { %v1931_v35 = vsel %vm1877_vm14, %v1929_v34, -inf }
 0xe31   : > { %1932 = vmax.xlane.f32.xlu1 %v1931_v35  ;;  %v1922_v36 = vmul.f32 %v2504_v28, %v1921_v29 }
 0xe33   : > { %v1926_v37 = vsel %vm1925_vm6, %v2504_v28, %v1922_v36 }
 0xe34   : > { %v1928_v12 = vmul.f32 %v1926_v37, %v1894_v13 }
 0xe36   : > { %v1930_v7 = vand.u32 2147483647, %v1928_v12 }
 0xe38   : > { %v1934_v38 = vsel %vm1877_vm14, %v1930_v7, -inf }
 0xe39   : > { %1935 = vmax.xlane.f32.xlu2 %v1934_v38 }
 0xea4   : > { %v1933_v44 = vpop.xlane.xlu1 %1932 }
 0xeac   : > { %v1936_v45 = vpop.xlane.xlu2 %1935 }
 0xead   : > { %v1937_v47 = vmax.f32 %v1933_v44, %v1936_v45 }
 0xeaf   : > { %v1938_v50 = vrot.slane %v1937_v47, 4 }
 0xeb1   : > { %v1939_v52 = vmax.f32 %v1937_v47, %v1938_v50 }
 0xeb3   : > { %v1940_v57 = vrot.slane %v1939_v52, 2 }
 0xeb5   : > { %v1941_v46 = vmax.f32 %v1939_v52, %v1940_v57 }
 0xeb7   : > { %v1942_v55 = vrot.slane %v1941_v46, 1 }
 0xeb9   : > { %v1943_v58 = vmax.f32 %v1941_v46, %v1942_v55 }
 0xebb   : > { %2505 = vrcp.f32 %v1943_v58  ;;  %v1955_v53 = vand.u32 2147483648, %v1943_v58  ;;  %v1953_v62 = vand.u32 2147483647, %v1943_v58  ;;  %vm1949_vm8 = vweird.f32 %v1943_v58 }
 0xebc   : > { %v2013_v23 = vmul.f32 %v1943_v58, %v2769_v43 }
 0xebd   : > { %v1956_v3 = vor.u32 1.1754944e-38, %v1955_v53  ;;  %vm1954_vm2 = vcmp.eq.f32.partialorder %v1953_v62, 8.507059e+37 }
 0xec1   : > { %v2506_v48 = vpop.eup %2505 }
 0xec2   : > { %v1945_v51 = vmul.f32 %v2506_v48, %v1943_v58  ;;  %vm1950_vm7 = vweird.f32 %v2506_v48 }
 0xec3   : > { %vm1951_vm9 = vmor %vm1949_vm8, %vm1950_vm7 }
 0xec4   : > { %v1946_v60 = vsub.f32 1.0, %v1945_v51 }
 0xec6   : > { %v1947_v42 = vmul.f32 %v2506_v48, %v1946_v60 }
 0xec8   : > { %v1948_v63 = vadd.f32 %v2506_v48, %v1947_v42 }
 0xeca   : > { %v1952_v1 = vsel %vm1951_vm9, %v2506_v48, %v1948_v63 }
 0xecb   : > { %v1957_v39 = vsel %vm1954_vm2, %v1956_v3, %v1952_v1 }
 0xecc   : > { %v1958_v2 = vmul.f32 128.0, %v1957_v39 }
 0xece   : > { %v1959_v4 = vmul.f32 %v1958_v2, %v1927_v32  ;;  %v1960_v56 = vmul.f32 %v1958_v2, %v1928_v12 }
 0xed0   : > { %v2339_v5 = vcvt.f32.s32 %v1959_v4  ;;  %v2347_v6 = vcvt.f32.s32 %v1960_v56  ;;  %v2337_v11 = vand.u32 2147483647, %v1959_v4  ;;  %v2342_v13 = vand.u32 2147483648, %v1959_v4 }
 0xed1   : > { %v2345_v14 = vand.u32 2147483647, %v1960_v56  ;;  %v2350_v17 = vand.u32 2147483648, %v1960_v56 }
 0xed2   : > { %v2340_v8 = vcvt.s32.f32 %v2339_v5  ;;  %v2348_v10 = vcvt.s32.f32 %v2347_v6  ;;  %vm2338_vm10 = vcmp.lt.f32.partialorder %v2337_v11, 8388608.0 }
 0xed3   : > { %vm2346_vm11 = vcmp.lt.f32.partialorder %v2345_v14, 8388608.0 }
 0xed4   : > { %v2341_v18 = vand.u32 2147483647, %v2340_v8  ;;  %v2349_v16 = vand.u32 2147483647, %v2348_v10 }
 0xed6   : > { %v2343_v9 = vor.u32 %v2342_v13, %v2341_v18  ;;  %v2351_v15 = vor.u32 %v2350_v17, %v2349_v16 }
 0xed8   : > { %v2344_v21 = vsel %vm2338_vm10, %v2343_v9, %v1959_v4  ;;  %v2352_v19 = vsel %vm2346_vm11, %v2351_v15, %v1960_v56 }
 0xed9   : > { %v1963_v22 = vpack.c.bf16 %v2352_v19, %v2344_v21 }
 0xedb   : > { %2270 = vmatmul.msk.bf16.vlgmr.msra.gmra.mxu3 %vm1877_vm14, %v1963_v22 }
 0xf5e   : > { %v2008_v26 = vpop.f32.mrf.mxu3 }
 0xf5f   : > { %v2014_v27 = vmul.f32 %v2013_v23, %v2008_v26 }
 0xf61   : > { %v2020_v28 = vmul.f32 %v2415_v24, %v2014_v27 }
 0xf63   : > { %v2026_v30 = vadd.f32 %v2416_v25, %v2020_v28 }
 0xf65   : > { %v2028_v61 = vadd.f32 %v2026_v30, %v2945_v59 }
 0xf66   : > { %v2010_v31 = vpop.f32.mrf.mxu3 }
 0xf67   : > { %2030 = vst.msk [vmem:[#allocation3] sm:$0xff] %vm667_vm1, %v2028_v61  ;;  %v2015_v43 = vmul.f32 %v2013_v23, %v2010_v31 }
 0xf69   : > { %v2021_v20 = vmul.f32 %v2415_v24, %v2015_v43 }
 0xf6b   : > { %v2027_v32 = vadd.f32 %v2416_v25, %v2021_v20 }
 0xf6d   : > { %v2029_v33 = vadd.f32 %v2027_v32, %v2949_v0 }
 0xf6f   : > { %2031 = vst.msk [vmem:[#allocation3 + $0x8] sm:$0xff] %vm667_vm1, %v2029_v33 }
 0xf70   : > { %2354 = dma.vmem_to_hbm [thread:$0]  (%p2357_p5), %s2038_s24, 256, %s2040_s5, [#allocation4], %s2572_s20, %s2572_s20, %s2568_s7  }
 0xf71   : > { %2544 = dma.done.wait (%p2357_p5), [#allocation4], 256  }
 0xf72   : > { %2546 = vsyncadd (%p2357_p5), [#allocation4], 4294967040 }
 0xf73 PF: > { %s3091_s1 = sld [smem:[#allocation6_spill]] }
 0xf79   : > { %s26_s18 = sadd.s32 1, %s3091_s1  }
 0xf7a   : > { %p23_p6 = scmp.ge.s32.totalorder %s26_s18, 4  }
 0xf7c   :  { %25 = sbr.rel (!%p23_p6) target bundleno = 11 (0xb), region = 144 }
 0xf81   :  { %2056 = vsyncpa [#allocation4], 1 }
 0xf82   :  { %2058 = vsyncpa [#allocation4 + $0x1], 1 }

</bundles_post_ra>
